<compile_context>
chip_gen: v5e
topology: v5e:2x2
jax: 0.10.0
libtpu: 0.0.40
codegen_flags: <defaults>
</compile_context>

<pallas_src>
import math
import functools

import jax
import jax.numpy as jnp
from jax.experimental import pallas as pl
from jax.experimental.pallas import tpu as pltpu


# --------------------------------------------------------------------------
# Kernel
# --------------------------------------------------------------------------
def _layernorm(x, gamma, beta, eps=1e-5):
    mean = jnp.mean(x, axis=-1, keepdims=True)
    var = jnp.mean(jnp.square(x - mean), axis=-1, keepdims=True)
    return (x - mean) * jax.lax.rsqrt(var + eps) * gamma + beta


def fused_transformer_kernel(x_ref, wqkv_ref, bqkv_ref, wo_ref, bo_ref,
                             g1_ref, b1_ref, w1_ref, bf1_ref,
                             w2_ref, bf2_ref, g2_ref, b2_ref,
                             fcw_ref, fcb_ref, out_ref, h_ref, cat_ref,
                             *, num_heads, batch, seq):
    """Grid = (batch_tile, layer).  One step == one post-norm encoder layer
    over this batch-tile's tokens.  The activation lives in `h_ref` (VMEM
    scratch) across layer steps; the vocab projection is emitted at the last
    layer step."""
    l = pl.program_id(1)
    n_layers = pl.num_programs(1)

    # Layer 0 of each batch tile: seed the resident activation.
    @pl.when(l == 0)
    def _():
        h_ref[...] = x_ref[...]

    ROWS, D = h_ref.shape                      # ROWS = batch_per_tile * seq
    hd = D // num_heads
    scale = 1.0 / math.sqrt(hd)

    xin = h_ref[...]                           # (ROWS, D) f32

    # ---- multi-head self-attention -------------------------------------
    # QKV projection for all tokens / heads in one MXU pass (bf16 operands,
    # f32 accumulation).  Columns are head-major: [h0: q k v | h1: q k v | …].
    qkv = jnp.dot(xin.astype(jnp.bfloat16), wqkv_ref[...],
                  preferred_element_type=jnp.float32) + bqkv_ref[...]  # (ROWS, 3D)

    for h in range(num_heads):                 # static unroll, H = 4
        base = h * 3 * hd                      # this head's contiguous lane group
        qh = qkv[:, base:base + hd].reshape(batch, seq, hd)
        kh = qkv[:, base + hd:base + 2 * hd].reshape(batch, seq, hd)
        vh = qkv[:, base + 2 * hd:base + 3 * hd].reshape(batch, seq, hd)

        s = jnp.einsum('bqd,bkd->bqk', qh, kh,
                       preferred_element_type=jnp.float32) * scale
        s = s - jnp.max(s, axis=-1, keepdims=True)
        p = jnp.exp(s)
        p = p * pl.reciprocal(jnp.sum(p, axis=-1, keepdims=True), approx=True)

        oh = jnp.einsum('bqk,bkd->bqd', p, vh,
                        preferred_element_type=jnp.float32)      # (b, S, hd)
        # Drop this head straight into its lane block of the concat buffer.
        cat_ref[:, h * hd:(h + 1) * hd] = oh.reshape(ROWS, hd)

    # Single fused output projection over the full K=D, bias folded in.
    attn = jnp.dot(cat_ref[...].astype(jnp.bfloat16), wo_ref[...],
                   preferred_element_type=jnp.float32) + bo_ref[...]

    # residual + LayerNorm 1 (dropout = 0 -> identity), f32 elementwise
    y = _layernorm(xin + attn, g1_ref[...], b1_ref[...])

    # ---- feed-forward (ReLU), bf16 matmul operands / f32 accumulation ---
    h1 = jnp.dot(y.astype(jnp.bfloat16), w1_ref[...],
                 preferred_element_type=jnp.float32) + bf1_ref[...]
    h1 = jnp.maximum(h1, 0.0)
    ff = jnp.dot(h1.astype(jnp.bfloat16), w2_ref[...],
                 preferred_element_type=jnp.float32) + bf2_ref[...]

    # residual + LayerNorm 2
    out = _layernorm(y + ff, g2_ref[...], b2_ref[...])
    h_ref[...] = out

    # ---- final vocab projection, fused into the last layer step ---------
    @pl.when(l == n_layers - 1)
    def _():
        out_ref[...] = (jnp.dot(out.astype(jnp.bfloat16), fcw_ref[...],
                                preferred_element_type=jnp.float32)
                        + fcb_ref[...]).astype(out_ref.dtype)


# --------------------------------------------------------------------------
# Wrapper
# --------------------------------------------------------------------------
def _default_batch_tiles(batch, seq):
    """2 tiles on v7x (2 TensorCores/chip), 1 elsewhere (pure overhead)."""
    try:
        two_core = "v7" in jax.devices()[0].device_kind.lower()
    except Exception:
        two_core = False
    if two_core and batch % 2 == 0 and ((batch // 2) * seq) % 8 == 0:
        return 2
    return 1


def fused_transformer(x2d, p, num_heads, batch, seq, num_batch_tiles=None):
    BS, D = x2d.shape
    L = p["wqkv"].shape[0]
    F = p["w1"].shape[2]
    Vp = p["fc_w"].shape[1]                    # lane-padded vocab (mult. of 128)

    BT = num_batch_tiles or _default_batch_tiles(batch, seq)
    assert batch % BT == 0
    bpt = batch // BT                          # whole batches per tile
    rows = bpt * seq                           # token rows per tile
    assert rows == BS or rows % 8 == 0         # sublane constraint

    def lspec(shape):                          # per-layer stacked weight
        n = len(shape)
        return pl.BlockSpec((None,) + shape,
                            lambda bt, l, _n=n: (l,) + (0,) * _n)

    def cspec(shape):                          # constant (grid-invariant)
        n = len(shape)
        return pl.BlockSpec(shape, lambda bt, l, _n=n: (0,) * _n)

    x_spec = pl.BlockSpec((rows, D), lambda bt, l: (bt, 0))
    out_spec = pl.BlockSpec((rows, Vp), lambda bt, l: (bt, 0))

    kern = functools.partial(fused_transformer_kernel, num_heads=num_heads,
                             batch=bpt, seq=seq)
    return pl.pallas_call(
        kern,
        out_shape=jax.ShapeDtypeStruct((BS, Vp), jnp.float32),
        grid=(BT, L),
        in_specs=[
            x_spec,                                  # x (embedded tokens)
            lspec((D, 3 * D)), lspec((1, 3 * D)),    # wqkv (head-major), bqkv
            lspec((D, D)), lspec((1, D)),            # wo (bf16), bo
            lspec((1, D)), lspec((1, D)),            # ln1 gamma/beta
            lspec((D, F)), lspec((1, F)),            # ffn w1, b1
            lspec((F, D)), lspec((1, D)),            # ffn w2, b2
            lspec((1, D)), lspec((1, D)),            # ln2 gamma/beta
            cspec((D, Vp)), cspec((1, Vp)),          # fc_w, fc_b
        ],
        out_specs=out_spec,
        scratch_shapes=[
            pltpu.VMEM((rows, D), jnp.float32),      # resident activation
            pltpu.VMEM((rows, D), jnp.float32),      # head-concat buffer
        ],
        compiler_params=pltpu.CompilerParams(
            dimension_semantics=("parallel", "arbitrary")),  # tiles ∥, layers seq
    )(x2d,
      p["wqkv"], p["bqkv"], p["wo"], p["bo"],
      p["g1"], p["b1"], p["w1"], p["bf1"],
      p["w2"], p["bf2"], p["g2"], p["b2"],
      p["fc_w"], p["fc_b"])


def positional_encoding(S, D):
    pos = jnp.arange(S, dtype=jnp.float32)[:, None]
    div = jnp.exp(jnp.arange(0, D, 2, dtype=jnp.float32)
                  * (-math.log(10000.0) / D))
    pe = jnp.zeros((S, D), dtype=jnp.float32)
    pe = pe.at[:, 0::2].set(jnp.sin(pos * div))
    pe = pe.at[:, 1::2].set(jnp.cos(pos * div))
    return pe


def transformer_forward(tokens, params, num_heads, vocab_size):
    B, S = tokens.shape
    D = params["embedding"].shape[1]

    # glue: embedding gather + scale + positional encoding (dropout = 0)
    x = params["embedding"][tokens] * math.sqrt(D)               # (B, S, D)
    x = x + positional_encoding(S, D)[None]
    x2d = x.reshape(B * S, D).astype(jnp.float32)

    logits_p = fused_transformer(x2d, params, num_heads, B, S)   # (B*S, Vpad)
    return logits_p[:, :vocab_size].reshape(B, S, vocab_size)


# --------------------------------------------------------------------------
# Deterministic parameter init (synthetic; no checkpoint loading)
# --------------------------------------------------------------------------
def init_params(key, vocab, D, F, L, vpad, num_heads):
    ks = jax.random.split(key, 6)
    s = 0.02
    hd = D // num_heads

    # QKV weight in HEAD-MAJOR column layout: (D, H, 3, hd) flattened, i.e.
    # columns [h0:q k v | h1:q k v | ...].  A real PyTorch in_proj_weight
    # W (3D, D) would be converted as:
    #   W.T.reshape(D, 3, H, hd).transpose(0, 2, 1, 3).reshape(D, 3D)
    wqkv = (jax.random.normal(ks[1], (L, D, num_heads, 3, hd), jnp.float32) * s
            ).reshape(L, D, 3 * D)

    fc_w = jax.random.normal(ks[5], (D, vocab), jnp.float32) * s
    fc_w = jnp.pad(fc_w, ((0, 0), (0, vpad - vocab)))            # lane-dense V

    return dict(
        embedding=jax.random.normal(ks[0], (vocab, D), jnp.float32),
        # all projection weights stored bf16 (MXU operands, halves weight DMA)
        wqkv=wqkv.astype(jnp.bfloat16),
        bqkv=jnp.zeros((L, 1, 3 * D), jnp.float32),
        wo=(jax.random.normal(ks[2], (L, D, D), jnp.float32) * s
            ).astype(jnp.bfloat16),
        bo=jnp.zeros((L, 1, D), jnp.float32),
        g1=jnp.ones((L, 1, D), jnp.float32),
        b1=jnp.zeros((L, 1, D), jnp.float32),
        w1=(jax.random.normal(ks[3], (L, D, F), jnp.float32) * s
            ).astype(jnp.bfloat16),
        bf1=jnp.zeros((L, 1, F), jnp.float32),
        w2=(jax.random.normal(ks[4], (L, F, D), jnp.float32) * s
            ).astype(jnp.bfloat16),
        bf2=jnp.zeros((L, 1, D), jnp.float32),
        g2=jnp.ones((L, 1, D), jnp.float32),
        b2=jnp.zeros((L, 1, D), jnp.float32),
        fc_w=fc_w.astype(jnp.bfloat16),
        fc_b=jnp.zeros((1, vpad), jnp.float32),
    )


if __name__ == "__main__":
    # small, module-consistent config
    VOCAB, EMBED_DIM, NUM_HEADS, NUM_LAYERS, DROPOUT = 50, 32, 4, 2, 0.0
    FFN_DIM = 2048            # nn.TransformerEncoderLayer default dim_feedforward
    B, S = 2, 8
    VPAD = 128                # vocab padded to one full lane width

    key = jax.random.PRNGKey(0)
    k_tok, k_par = jax.random.split(key, 2)

    params = init_params(k_par, VOCAB, EMBED_DIM, FFN_DIM, NUM_LAYERS, VPAD,
                         NUM_HEADS)
    tokens = jax.random.randint(k_tok, (B, S), 0, VOCAB, dtype=jnp.int32)

    out = transformer_forward(tokens, params, NUM_HEADS, VOCAB)
    jax.block_until_ready(out)
    assert out.shape == (B, S, VOCAB) and out.dtype == jnp.float32
    assert bool(jnp.all(jnp.isfinite(out)))
    print("KERNEL_OK")
</pallas_src>

<mosaic_0001>
module attributes {stable_mosaic.version = 11 : i64} {
  func.func @fused_transformer_kernel(%arg0: i32, %arg1: i32, %arg2: memref<16x32xf32, #tpu.memory_space<vmem>>, %arg3: memref<1x32x96xbf16, #tpu.memory_space<vmem>>, %arg4: memref<1x1x96xf32, #tpu.memory_space<vmem>>, %arg5: memref<1x32x32xbf16, #tpu.memory_space<vmem>>, %arg6: memref<1x1x32xf32, #tpu.memory_space<vmem>>, %arg7: memref<1x1x32xf32, #tpu.memory_space<vmem>>, %arg8: memref<1x1x32xf32, #tpu.memory_space<vmem>>, %arg9: memref<1x32x2048xbf16, #tpu.memory_space<vmem>>, %arg10: memref<1x1x2048xf32, #tpu.memory_space<vmem>>, %arg11: memref<1x2048x32xbf16, #tpu.memory_space<vmem>>, %arg12: memref<1x1x32xf32, #tpu.memory_space<vmem>>, %arg13: memref<1x1x32xf32, #tpu.memory_space<vmem>>, %arg14: memref<1x1x32xf32, #tpu.memory_space<vmem>>, %arg15: memref<32x128xbf16, #tpu.memory_space<vmem>>, %arg16: memref<1x128xf32, #tpu.memory_space<vmem>>, %arg17: memref<16x128xf32, #tpu.memory_space<vmem>>, %arg18: memref<16x32xf32, #tpu.memory_space<vmem>>, %arg19: memref<16x32xf32, #tpu.memory_space<vmem>>) attributes {dimension_semantics = [#tpu.dimension_semantics<parallel>, #tpu.dimension_semantics<arbitrary>], iteration_bounds = array<i64: 1, 2>, scalar_prefetch = 0 : i64, scratch_operands = 2 : i64, tpu.core_type = #tpu.core_type<tc>, window_params = [{transform_indices = @transform_0, window_bounds = array<i64: 16, 32>}, {transform_indices = @transform_1, window_bounds = array<i64: 1, 32, 96>}, {transform_indices = @transform_2, window_bounds = array<i64: 1, 1, 96>}, {transform_indices = @transform_3, window_bounds = array<i64: 1, 32, 32>}, {transform_indices = @transform_4, window_bounds = array<i64: 1, 1, 32>}, {transform_indices = @transform_5, window_bounds = array<i64: 1, 1, 32>}, {transform_indices = @transform_6, window_bounds = array<i64: 1, 1, 32>}, {transform_indices = @transform_7, window_bounds = array<i64: 1, 32, 2048>}, {transform_indices = @transform_8, window_bounds = array<i64: 1, 1, 2048>}, {transform_indices = @transform_9, window_bounds = array<i64: 1, 2048, 32>}, {transform_indices = @transform_10, window_bounds = array<i64: 1, 1, 32>}, {transform_indices = @transform_11, window_bounds = array<i64: 1, 1, 32>}, {transform_indices = @transform_12, window_bounds = array<i64: 1, 1, 32>}, {pipeline_mode = #tpu.pipeline_mode<synchronous>, transform_indices = @transform_13, window_bounds = array<i64: 32, 128>}, {pipeline_mode = #tpu.pipeline_mode<synchronous>, transform_indices = @transform_14, window_bounds = array<i64: 1, 128>}, {transform_indices = @transform_15, window_bounds = array<i64: 16, 128>}]} {
    %c0_i32 = arith.constant 0 : i32
    %0 = arith.cmpi eq, %arg1, %c0_i32 : i32
    %1 = arith.extui %0 : i1 to i32
    %c0_i32_0 = arith.constant 0 : i32
    %2 = arith.cmpi ne, %1, %c0_i32_0 : i32
    scf.if %2 {
      %c0_82 = arith.constant 0 : index
      %c0_83 = arith.constant 0 : index
      %185 = vector.load %arg2[%c0_82, %c0_83] : memref<16x32xf32, #tpu.memory_space<vmem>>, vector<16x32xf32>
      %c0_84 = arith.constant 0 : index
      %c0_85 = arith.constant 0 : index
      %186 = vector.load %arg18[%c0_84, %c0_85] : memref<16x32xf32, #tpu.memory_space<vmem>>, vector<16x32xf32>
      tpu.vector_store %arg18[%c0_84, %c0_85], %185 {strides = array<i32>} : memref<16x32xf32, #tpu.memory_space<vmem>>, vector<16x32xf32>,
    } else {
    }
    %c0 = arith.constant 0 : index
    %c0_1 = arith.constant 0 : index
    %3 = vector.load %arg18[%c0, %c0_1] : memref<16x32xf32, #tpu.memory_space<vmem>>, vector<16x32xf32>
    %4 = arith.truncf %3 : vector<16x32xf32> to vector<16x32xbf16>
    %c0_2 = arith.constant 0 : index
    %c0_3 = arith.constant 0 : index
    %c0_4 = arith.constant 0 : index
    %5 = vector.load %arg3[%c0_2, %c0_3, %c0_4] : memref<1x32x96xbf16, #tpu.memory_space<vmem>>, vector<1x32x96xbf16>
    %6 = vector.shape_cast %5 : vector<1x32x96xbf16> to vector<32x96xbf16>
    %cst = arith.constant dense<0.000000e+00> : vector<16x96xf32>
    %7 = tpu.matmul %4, %6, %cst {dimension_numbers = #tpu.dot_dimension_numbers<[1], [0], [0], [1], [0, 0, 1, 1], [], []>} : vector<16x32xbf16>, vector<32x96xbf16>, vector<16x96xf32> -> vector<16x96xf32>
    %c0_5 = arith.constant 0 : index
    %c0_6 = arith.constant 0 : index
    %c0_7 = arith.constant 0 : index
    %8 = vector.load %arg4[%c0_5, %c0_6, %c0_7] : memref<1x1x96xf32, #tpu.memory_space<vmem>>, vector<1x1x96xf32>
    %9 = vector.shape_cast %8 : vector<1x1x96xf32> to vector<1x96xf32>
    %10 = vector.broadcast %9 : vector<1x96xf32> to vector<16x96xf32>
    %11 = arith.addf %7, %10 : vector<16x96xf32>
    %12 = vector.extract_strided_slice %11 {offsets = [0, 0], sizes = [16, 8], strides = [1, 1]} : vector<16x96xf32> to vector<16x8xf32>
    %13 = vector.shape_cast %12 : vector<16x8xf32> to vector<2x8x8xf32>
    %14 = vector.extract_strided_slice %11 {offsets = [0, 8], sizes = [16, 8], strides = [1, 1]} : vector<16x96xf32> to vector<16x8xf32>
    %15 = vector.shape_cast %14 : vector<16x8xf32> to vector<2x8x8xf32>
    %16 = vector.extract_strided_slice %11 {offsets = [0, 16], sizes = [16, 8], strides = [1, 1]} : vector<16x96xf32> to vector<16x8xf32>
    %17 = vector.shape_cast %16 : vector<16x8xf32> to vector<2x8x8xf32>
    "tpu.trace_start"() <{level = 10 : i32, message = "bqd,bkd->bqk"}> : () -> ()
    %cst_8 = arith.constant dense<0.000000e+00> : vector<2x8x8xf32>
    %18 = tpu.matmul %13, %15, %cst_8 {dimension_numbers = #tpu.dot_dimension_numbers<[2], [2], [1], [1], [0, 0, 0, 1, 1, 1], [0], [0]>} : vector<2x8x8xf32>, vector<2x8x8xf32>, vector<2x8x8xf32> -> vector<2x8x8xf32>
    "tpu.trace_stop"() : () -> ()
    %cst_9 = arith.constant 0.353553385 : f32
    %19 = vector.broadcast %cst_9 : f32 to vector<2x8x8xf32>
    %20 = arith.mulf %18, %19 : vector<2x8x8xf32>
    %cst_10 = arith.constant dense<0xFF800000> : vector<2x8xf32>
    %21 = vector.multi_reduction <maximumf>, %20, %cst_10 [2] : vector<2x8x8xf32> to vector<2x8xf32>
    %22 = vector.shape_cast %21 : vector<2x8xf32> to vector<2x8x1xf32>
    %23 = vector.broadcast %22 : vector<2x8x1xf32> to vector<2x8x8xf32>
    %24 = arith.subf %20, %23 : vector<2x8x8xf32>
    %25 = math.exp %24 : vector<2x8x8xf32>
    %cst_11 = arith.constant dense<0.000000e+00> : vector<2x8xf32>
    %26 = vector.multi_reduction <add>, %25, %cst_11 [2] : vector<2x8x8xf32> to vector<2x8xf32>
    %27 = vector.shape_cast %26 : vector<2x8xf32> to vector<2x8x1xf32>
    %28 = tpu.reciprocal %27 {approx = true} : vector<2x8x1xf32> -> vector<2x8x1xf32>
    %29 = vector.broadcast %28 : vector<2x8x1xf32> to vector<2x8x8xf32>
    %30 = arith.mulf %25, %29 : vector<2x8x8xf32>
    "tpu.trace_start"() <{level = 10 : i32, message = "bqk,bkd->bqd"}> : () -> ()
    %cst_12 = arith.constant dense<0.000000e+00> : vector<2x8x8xf32>
    %31 = tpu.matmul %30, %17, %cst_12 {dimension_numbers = #tpu.dot_dimension_numbers<[2], [1], [1], [2], [0, 0, 0, 1, 1, 2], [0], [0]>} : vector<2x8x8xf32>, vector<2x8x8xf32>, vector<2x8x8xf32> -> vector<2x8x8xf32>
    "tpu.trace_stop"() : () -> ()
    %32 = vector.shape_cast %31 : vector<2x8x8xf32> to vector<16x8xf32>
    %c0_13 = arith.constant 0 : index
    %c0_14 = arith.constant 0 : index
    %33 = vector.load %arg19[%c0_13, %c0_14] : memref<16x32xf32, #tpu.memory_space<vmem>>, vector<16x8xf32>
    tpu.vector_store %arg19[%c0_13, %c0_14], %32 {strides = array<i32>} : memref<16x32xf32, #tpu.memory_space<vmem>>, vector<16x8xf32>,
    %34 = vector.extract_strided_slice %11 {offsets = [0, 24], sizes = [16, 8], strides = [1, 1]} : vector<16x96xf32> to vector<16x8xf32>
    %35 = vector.shape_cast %34 : vector<16x8xf32> to vector<2x8x8xf32>
    %36 = vector.extract_strided_slice %11 {offsets = [0, 32], sizes = [16, 8], strides = [1, 1]} : vector<16x96xf32> to vector<16x8xf32>
    %37 = vector.shape_cast %36 : vector<16x8xf32> to vector<2x8x8xf32>
    %38 = vector.extract_strided_slice %11 {offsets = [0, 40], sizes = [16, 8], strides = [1, 1]} : vector<16x96xf32> to vector<16x8xf32>
    %39 = vector.shape_cast %38 : vector<16x8xf32> to vector<2x8x8xf32>
    "tpu.trace_start"() <{level = 10 : i32, message = "bqd,bkd->bqk"}> : () -> ()
    %cst_15 = arith.constant dense<0.000000e+00> : vector<2x8x8xf32>
    %40 = tpu.matmul %35, %37, %cst_15 {dimension_numbers = #tpu.dot_dimension_numbers<[2], [2], [1], [1], [0, 0, 0, 1, 1, 1], [0], [0]>} : vector<2x8x8xf32>, vector<2x8x8xf32>, vector<2x8x8xf32> -> vector<2x8x8xf32>
    "tpu.trace_stop"() : () -> ()
    %cst_16 = arith.constant 0.353553385 : f32
    %41 = vector.broadcast %cst_16 : f32 to vector<2x8x8xf32>
    %42 = arith.mulf %40, %41 : vector<2x8x8xf32>
    %cst_17 = arith.constant dense<0xFF800000> : vector<2x8xf32>
    %43 = vector.multi_reduction <maximumf>, %42, %cst_17 [2] : vector<2x8x8xf32> to vector<2x8xf32>
    %44 = vector.shape_cast %43 : vector<2x8xf32> to vector<2x8x1xf32>
    %45 = vector.broadcast %44 : vector<2x8x1xf32> to vector<2x8x8xf32>
    %46 = arith.subf %42, %45 : vector<2x8x8xf32>
    %47 = math.exp %46 : vector<2x8x8xf32>
    %cst_18 = arith.constant dense<0.000000e+00> : vector<2x8xf32>
    %48 = vector.multi_reduction <add>, %47, %cst_18 [2] : vector<2x8x8xf32> to vector<2x8xf32>
    %49 = vector.shape_cast %48 : vector<2x8xf32> to vector<2x8x1xf32>
    %50 = tpu.reciprocal %49 {approx = true} : vector<2x8x1xf32> -> vector<2x8x1xf32>
    %51 = vector.broadcast %50 : vector<2x8x1xf32> to vector<2x8x8xf32>
    %52 = arith.mulf %47, %51 : vector<2x8x8xf32>
    "tpu.trace_start"() <{level = 10 : i32, message = "bqk,bkd->bqd"}> : () -> ()
    %cst_19 = arith.constant dense<0.000000e+00> : vector<2x8x8xf32>
    %53 = tpu.matmul %52, %39, %cst_19 {dimension_numbers = #tpu.dot_dimension_numbers<[2], [1], [1], [2], [0, 0, 0, 1, 1, 2], [0], [0]>} : vector<2x8x8xf32>, vector<2x8x8xf32>, vector<2x8x8xf32> -> vector<2x8x8xf32>
    "tpu.trace_stop"() : () -> ()
    %54 = vector.shape_cast %53 : vector<2x8x8xf32> to vector<16x8xf32>
    %c0_20 = arith.constant 0 : index
    %c8 = arith.constant 8 : index
    %55 = vector.load %arg19[%c0_20, %c8] : memref<16x32xf32, #tpu.memory_space<vmem>>, vector<16x8xf32>
    tpu.vector_store %arg19[%c0_20, %c8], %54 {strides = array<i32>} : memref<16x32xf32, #tpu.memory_space<vmem>>, vector<16x8xf32>,
    %56 = vector.extract_strided_slice %11 {offsets = [0, 48], sizes = [16, 8], strides = [1, 1]} : vector<16x96xf32> to vector<16x8xf32>
    %57 = vector.shape_cast %56 : vector<16x8xf32> to vector<2x8x8xf32>
    %58 = vector.extract_strided_slice %11 {offsets = [0, 56], sizes = [16, 8], strides = [1, 1]} : vector<16x96xf32> to vector<16x8xf32>
    %59 = vector.shape_cast %58 : vector<16x8xf32> to vector<2x8x8xf32>
    %60 = vector.extract_strided_slice %11 {offsets = [0, 64], sizes = [16, 8], strides = [1, 1]} : vector<16x96xf32> to vector<16x8xf32>
    %61 = vector.shape_cast %60 : vector<16x8xf32> to vector<2x8x8xf32>
    "tpu.trace_start"() <{level = 10 : i32, message = "bqd,bkd->bqk"}> : () -> ()
    %cst_21 = arith.constant dense<0.000000e+00> : vector<2x8x8xf32>
    %62 = tpu.matmul %57, %59, %cst_21 {dimension_numbers = #tpu.dot_dimension_numbers<[2], [2], [1], [1], [0, 0, 0, 1, 1, 1], [0], [0]>} : vector<2x8x8xf32>, vector<2x8x8xf32>, vector<2x8x8xf32> -> vector<2x8x8xf32>
    "tpu.trace_stop"() : () -> ()
    %cst_22 = arith.constant 0.353553385 : f32
    %63 = vector.broadcast %cst_22 : f32 to vector<2x8x8xf32>
    %64 = arith.mulf %62, %63 : vector<2x8x8xf32>
    %cst_23 = arith.constant dense<0xFF800000> : vector<2x8xf32>
    %65 = vector.multi_reduction <maximumf>, %64, %cst_23 [2] : vector<2x8x8xf32> to vector<2x8xf32>
    %66 = vector.shape_cast %65 : vector<2x8xf32> to vector<2x8x1xf32>
    %67 = vector.broadcast %66 : vector<2x8x1xf32> to vector<2x8x8xf32>
    %68 = arith.subf %64, %67 : vector<2x8x8xf32>
    %69 = math.exp %68 : vector<2x8x8xf32>
    %cst_24 = arith.constant dense<0.000000e+00> : vector<2x8xf32>
    %70 = vector.multi_reduction <add>, %69, %cst_24 [2] : vector<2x8x8xf32> to vector<2x8xf32>
    %71 = vector.shape_cast %70 : vector<2x8xf32> to vector<2x8x1xf32>
    %72 = tpu.reciprocal %71 {approx = true} : vector<2x8x1xf32> -> vector<2x8x1xf32>
    %73 = vector.broadcast %72 : vector<2x8x1xf32> to vector<2x8x8xf32>
    %74 = arith.mulf %69, %73 : vector<2x8x8xf32>
    "tpu.trace_start"() <{level = 10 : i32, message = "bqk,bkd->bqd"}> : () -> ()
    %cst_25 = arith.constant dense<0.000000e+00> : vector<2x8x8xf32>
    %75 = tpu.matmul %74, %61, %cst_25 {dimension_numbers = #tpu.dot_dimension_numbers<[2], [1], [1], [2], [0, 0, 0, 1, 1, 2], [0], [0]>} : vector<2x8x8xf32>, vector<2x8x8xf32>, vector<2x8x8xf32> -> vector<2x8x8xf32>
    "tpu.trace_stop"() : () -> ()
    %76 = vector.shape_cast %75 : vector<2x8x8xf32> to vector<16x8xf32>
    %c0_26 = arith.constant 0 : index
    %c16 = arith.constant 16 : index
    %77 = vector.load %arg19[%c0_26, %c16] : memref<16x32xf32, #tpu.memory_space<vmem>>, vector<16x8xf32>
    tpu.vector_store %arg19[%c0_26, %c16], %76 {strides = array<i32>} : memref<16x32xf32, #tpu.memory_space<vmem>>, vector<16x8xf32>,
    %78 = vector.extract_strided_slice %11 {offsets = [0, 72], sizes = [16, 8], strides = [1, 1]} : vector<16x96xf32> to vector<16x8xf32>
    %79 = vector.shape_cast %78 : vector<16x8xf32> to vector<2x8x8xf32>
    %80 = vector.extract_strided_slice %11 {offsets = [0, 80], sizes = [16, 8], strides = [1, 1]} : vector<16x96xf32> to vector<16x8xf32>
    %81 = vector.shape_cast %80 : vector<16x8xf32> to vector<2x8x8xf32>
    %82 = vector.extract_strided_slice %11 {offsets = [0, 88], sizes = [16, 8], strides = [1, 1]} : vector<16x96xf32> to vector<16x8xf32>
    %83 = vector.shape_cast %82 : vector<16x8xf32> to vector<2x8x8xf32>
    "tpu.trace_start"() <{level = 10 : i32, message = "bqd,bkd->bqk"}> : () -> ()
    %cst_27 = arith.constant dense<0.000000e+00> : vector<2x8x8xf32>
    %84 = tpu.matmul %79, %81, %cst_27 {dimension_numbers = #tpu.dot_dimension_numbers<[2], [2], [1], [1], [0, 0, 0, 1, 1, 1], [0], [0]>} : vector<2x8x8xf32>, vector<2x8x8xf32>, vector<2x8x8xf32> -> vector<2x8x8xf32>
    "tpu.trace_stop"() : () -> ()
    %cst_28 = arith.constant 0.353553385 : f32
    %85 = vector.broadcast %cst_28 : f32 to vector<2x8x8xf32>
    %86 = arith.mulf %84, %85 : vector<2x8x8xf32>
    %cst_29 = arith.constant dense<0xFF800000> : vector<2x8xf32>
    %87 = vector.multi_reduction <maximumf>, %86, %cst_29 [2] : vector<2x8x8xf32> to vector<2x8xf32>
    %88 = vector.shape_cast %87 : vector<2x8xf32> to vector<2x8x1xf32>
    %89 = vector.broadcast %88 : vector<2x8x1xf32> to vector<2x8x8xf32>
    %90 = arith.subf %86, %89 : vector<2x8x8xf32>
    %91 = math.exp %90 : vector<2x8x8xf32>
    %cst_30 = arith.constant dense<0.000000e+00> : vector<2x8xf32>
    %92 = vector.multi_reduction <add>, %91, %cst_30 [2] : vector<2x8x8xf32> to vector<2x8xf32>
    %93 = vector.shape_cast %92 : vector<2x8xf32> to vector<2x8x1xf32>
    %94 = tpu.reciprocal %93 {approx = true} : vector<2x8x1xf32> -> vector<2x8x1xf32>
    %95 = vector.broadcast %94 : vector<2x8x1xf32> to vector<2x8x8xf32>
    %96 = arith.mulf %91, %95 : vector<2x8x8xf32>
    "tpu.trace_start"() <{level = 10 : i32, message = "bqk,bkd->bqd"}> : () -> ()
    %cst_31 = arith.constant dense<0.000000e+00> : vector<2x8x8xf32>
    %97 = tpu.matmul %96, %83, %cst_31 {dimension_numbers = #tpu.dot_dimension_numbers<[2], [1], [1], [2], [0, 0, 0, 1, 1, 2], [0], [0]>} : vector<2x8x8xf32>, vector<2x8x8xf32>, vector<2x8x8xf32> -> vector<2x8x8xf32>
    "tpu.trace_stop"() : () -> ()
    %98 = vector.shape_cast %97 : vector<2x8x8xf32> to vector<16x8xf32>
    %c0_32 = arith.constant 0 : index
    %c24 = arith.constant 24 : index
    %99 = vector.load %arg19[%c0_32, %c24] : memref<16x32xf32, #tpu.memory_space<vmem>>, vector<16x8xf32>
    tpu.vector_store %arg19[%c0_32, %c24], %98 {strides = array<i32>} : memref<16x32xf32, #tpu.memory_space<vmem>>, vector<16x8xf32>,
    %c0_33 = arith.constant 0 : index
    %c0_34 = arith.constant 0 : index
    %100 = vector.load %arg19[%c0_33, %c0_34] : memref<16x32xf32, #tpu.memory_space<vmem>>, vector<16x32xf32>
    %101 = arith.truncf %100 : vector<16x32xf32> to vector<16x32xbf16>
    %c0_35 = arith.constant 0 : index
    %c0_36 = arith.constant 0 : index
    %c0_37 = arith.constant 0 : index
    %102 = vector.load %arg5[%c0_35, %c0_36, %c0_37] : memref<1x32x32xbf16, #tpu.memory_space<vmem>>, vector<1x32x32xbf16>
    %103 = vector.shape_cast %102 : vector<1x32x32xbf16> to vector<32x32xbf16>
    %cst_38 = arith.constant dense<0.000000e+00> : vector<16x32xf32>
    %104 = tpu.matmul %101, %103, %cst_38 {dimension_numbers = #tpu.dot_dimension_numbers<[1], [0], [0], [1], [0, 0, 1, 1], [], []>} : vector<16x32xbf16>, vector<32x32xbf16>, vector<16x32xf32> -> vector<16x32xf32>
    %c0_39 = arith.constant 0 : index
    %c0_40 = arith.constant 0 : index
    %c0_41 = arith.constant 0 : index
    %105 = vector.load %arg6[%c0_39, %c0_40, %c0_41] : memref<1x1x32xf32, #tpu.memory_space<vmem>>, vector<1x1x32xf32>
    %106 = vector.shape_cast %105 : vector<1x1x32xf32> to vector<1x32xf32>
    %107 = vector.broadcast %106 : vector<1x32xf32> to vector<16x32xf32>
    %108 = arith.addf %104, %107 : vector<16x32xf32>
    %109 = arith.addf %3, %108 : vector<16x32xf32>
    %c0_42 = arith.constant 0 : index
    %c0_43 = arith.constant 0 : index
    %c0_44 = arith.constant 0 : index
    %110 = vector.load %arg7[%c0_42, %c0_43, %c0_44] : memref<1x1x32xf32, #tpu.memory_space<vmem>>, vector<1x1x32xf32>
    %111 = vector.shape_cast %110 : vector<1x1x32xf32> to vector<1x32xf32>
    %c0_45 = arith.constant 0 : index
    %c0_46 = arith.constant 0 : index
    %c0_47 = arith.constant 0 : index
    %112 = vector.load %arg8[%c0_45, %c0_46, %c0_47] : memref<1x1x32xf32, #tpu.memory_space<vmem>>, vector<1x1x32xf32>
    %113 = vector.shape_cast %112 : vector<1x1x32xf32> to vector<1x32xf32>
    %cst_48 = arith.constant dense<0.000000e+00> : vector<16xf32>
    %114 = vector.multi_reduction <add>, %109, %cst_48 [1] : vector<16x32xf32> to vector<16xf32>
    %115 = vector.shape_cast %114 : vector<16xf32> to vector<16x1xf32>
    %cst_49 = arith.constant 3.200000e+01 : f32
    %116 = vector.broadcast %cst_49 : f32 to vector<16x1xf32>
    %117 = arith.divf %115, %116 : vector<16x1xf32>
    %118 = vector.broadcast %117 : vector<16x1xf32> to vector<16x32xf32>
    %119 = arith.subf %109, %118 : vector<16x32xf32>
    %120 = arith.mulf %119, %119 : vector<16x32xf32>
    %cst_50 = arith.constant dense<0.000000e+00> : vector<16xf32>
    %121 = vector.multi_reduction <add>, %120, %cst_50 [1] : vector<16x32xf32> to vector<16xf32>
    %122 = vector.shape_cast %121 : vector<16xf32> to vector<16x1xf32>
    %cst_51 = arith.constant 3.200000e+01 : f32
    %123 = vector.broadcast %cst_51 : f32 to vector<16x1xf32>
    %124 = arith.divf %122, %123 : vector<16x1xf32>
    %125 = vector.broadcast %117 : vector<16x1xf32> to vector<16x32xf32>
    %126 = arith.subf %109, %125 : vector<16x32xf32>
    %cst_52 = arith.constant 9.99999974E-6 : f32
    %127 = vector.broadcast %cst_52 : f32 to vector<16x1xf32>
    %128 = arith.addf %124, %127 : vector<16x1xf32>
    %129 = math.rsqrt %128 : vector<16x1xf32>
    %130 = vector.broadcast %129 : vector<16x1xf32> to vector<16x32xf32>
    %131 = arith.mulf %126, %130 : vector<16x32xf32>
    %132 = vector.broadcast %111 : vector<1x32xf32> to vector<16x32xf32>
    %133 = arith.mulf %131, %132 : vector<16x32xf32>
    %134 = vector.broadcast %113 : vector<1x32xf32> to vector<16x32xf32>
    %135 = arith.addf %133, %134 : vector<16x32xf32>
    %136 = arith.truncf %135 : vector<16x32xf32> to vector<16x32xbf16>
    %c0_53 = arith.constant 0 : index
    %c0_54 = arith.constant 0 : index
    %c0_55 = arith.constant 0 : index
    %137 = vector.load %arg9[%c0_53, %c0_54, %c0_55] : memref<1x32x2048xbf16, #tpu.memory_space<vmem>>, vector<1x32x2048xbf16>
    %138 = vector.shape_cast %137 : vector<1x32x2048xbf16> to vector<32x2048xbf16>
    %cst_56 = arith.constant dense<0.000000e+00> : vector<16x2048xf32>
    %139 = tpu.matmul %136, %138, %cst_56 {dimension_numbers = #tpu.dot_dimension_numbers<[1], [0], [0], [1], [0, 0, 1, 1], [], []>} : vector<16x32xbf16>, vector<32x2048xbf16>, vector<16x2048xf32> -> vector<16x2048xf32>
    %c0_57 = arith.constant 0 : index
    %c0_58 = arith.constant 0 : index
    %c0_59 = arith.constant 0 : index
    %140 = vector.load %arg10[%c0_57, %c0_58, %c0_59] : memref<1x1x2048xf32, #tpu.memory_space<vmem>>, vector<1x1x2048xf32>
    %141 = vector.shape_cast %140 : vector<1x1x2048xf32> to vector<1x2048xf32>
    %142 = vector.broadcast %141 : vector<1x2048xf32> to vector<16x2048xf32>
    %143 = arith.addf %139, %142 : vector<16x2048xf32>
    %cst_60 = arith.constant 0.000000e+00 : f32
    %144 = vector.broadcast %cst_60 : f32 to vector<16x2048xf32>
    %145 = arith.maximumf %143, %144 : vector<16x2048xf32>
    %146 = arith.truncf %145 : vector<16x2048xf32> to vector<16x2048xbf16>
    %c0_61 = arith.constant 0 : index
    %c0_62 = arith.constant 0 : index
    %c0_63 = arith.constant 0 : index
    %147 = vector.load %arg11[%c0_61, %c0_62, %c0_63] : memref<1x2048x32xbf16, #tpu.memory_space<vmem>>, vector<1x2048x32xbf16>
    %148 = vector.shape_cast %147 : vector<1x2048x32xbf16> to vector<2048x32xbf16>
    %cst_64 = arith.constant dense<0.000000e+00> : vector<16x32xf32>
    %149 = tpu.matmul %146, %148, %cst_64 {dimension_numbers = #tpu.dot_dimension_numbers<[1], [0], [0], [1], [0, 0, 1, 1], [], []>} : vector<16x2048xbf16>, vector<2048x32xbf16>, vector<16x32xf32> -> vector<16x32xf32>
    %c0_65 = arith.constant 0 : index
    %c0_66 = arith.constant 0 : index
    %c0_67 = arith.constant 0 : index
    %150 = vector.load %arg12[%c0_65, %c0_66, %c0_67] : memref<1x1x32xf32, #tpu.memory_space<vmem>>, vector<1x1x32xf32>
    %151 = vector.shape_cast %150 : vector<1x1x32xf32> to vector<1x32xf32>
    %152 = vector.broadcast %151 : vector<1x32xf32> to vector<16x32xf32>
    %153 = arith.addf %149, %152 : vector<16x32xf32>
    %154 = arith.addf %135, %153 : vector<16x32xf32>
    %c0_68 = arith.constant 0 : index
    %c0_69 = arith.constant 0 : index
    %c0_70 = arith.constant 0 : index
    %155 = vector.load %arg13[%c0_68, %c0_69, %c0_70] : memref<1x1x32xf32, #tpu.memory_space<vmem>>, vector<1x1x32xf32>
    %156 = vector.shape_cast %155 : vector<1x1x32xf32> to vector<1x32xf32>
    %c0_71 = arith.constant 0 : index
    %c0_72 = arith.constant 0 : index
    %c0_73 = arith.constant 0 : index
    %157 = vector.load %arg14[%c0_71, %c0_72, %c0_73] : memref<1x1x32xf32, #tpu.memory_space<vmem>>, vector<1x1x32xf32>
    %158 = vector.shape_cast %157 : vector<1x1x32xf32> to vector<1x32xf32>
    %cst_74 = arith.constant dense<0.000000e+00> : vector<16xf32>
    %159 = vector.multi_reduction <add>, %154, %cst_74 [1] : vector<16x32xf32> to vector<16xf32>
    %160 = vector.shape_cast %159 : vector<16xf32> to vector<16x1xf32>
    %cst_75 = arith.constant 3.200000e+01 : f32
    %161 = vector.broadcast %cst_75 : f32 to vector<16x1xf32>
    %162 = arith.divf %160, %161 : vector<16x1xf32>
    %163 = vector.broadcast %162 : vector<16x1xf32> to vector<16x32xf32>
    %164 = arith.subf %154, %163 : vector<16x32xf32>
    %165 = arith.mulf %164, %164 : vector<16x32xf32>
    %cst_76 = arith.constant dense<0.000000e+00> : vector<16xf32>
    %166 = vector.multi_reduction <add>, %165, %cst_76 [1] : vector<16x32xf32> to vector<16xf32>
    %167 = vector.shape_cast %166 : vector<16xf32> to vector<16x1xf32>
    %cst_77 = arith.constant 3.200000e+01 : f32
    %168 = vector.broadcast %cst_77 : f32 to vector<16x1xf32>
    %169 = arith.divf %167, %168 : vector<16x1xf32>
    %170 = vector.broadcast %162 : vector<16x1xf32> to vector<16x32xf32>
    %171 = arith.subf %154, %170 : vector<16x32xf32>
    %cst_78 = arith.constant 9.99999974E-6 : f32
    %172 = vector.broadcast %cst_78 : f32 to vector<16x1xf32>
    %173 = arith.addf %169, %172 : vector<16x1xf32>
    %174 = math.rsqrt %173 : vector<16x1xf32>
    %175 = vector.broadcast %174 : vector<16x1xf32> to vector<16x32xf32>
    %176 = arith.mulf %171, %175 : vector<16x32xf32>
    %177 = vector.broadcast %156 : vector<1x32xf32> to vector<16x32xf32>
    %178 = arith.mulf %176, %177 : vector<16x32xf32>
    %179 = vector.broadcast %158 : vector<1x32xf32> to vector<16x32xf32>
    %180 = arith.addf %178, %179 : vector<16x32xf32>
    %c0_79 = arith.constant 0 : index
    %c0_80 = arith.constant 0 : index
    %181 = vector.load %arg18[%c0_79, %c0_80] : memref<16x32xf32, #tpu.memory_space<vmem>>, vector<16x32xf32>
    tpu.vector_store %arg18[%c0_79, %c0_80], %180 {strides = array<i32>} : memref<16x32xf32, #tpu.memory_space<vmem>>, vector<16x32xf32>,
    %c1_i32 = arith.constant 1 : i32
    %182 = arith.cmpi eq, %arg1, %c1_i32 : i32
    %183 = arith.extui %182 : i1 to i32
    %c0_i32_81 = arith.constant 0 : i32
    %184 = arith.cmpi ne, %183, %c0_i32_81 : i32
    scf.if %184 {
      %185 = arith.truncf %180 : vector<16x32xf32> to vector<16x32xbf16>
      %c0_82 = arith.constant 0 : index
      %c0_83 = arith.constant 0 : index
      %186 = vector.load %arg15[%c0_82, %c0_83] : memref<32x128xbf16, #tpu.memory_space<vmem>>, vector<32x128xbf16>
      %cst_84 = arith.constant dense<0.000000e+00> : vector<16x128xf32>
      %187 = tpu.matmul %185, %186, %cst_84 {dimension_numbers = #tpu.dot_dimension_numbers<[1], [0], [0], [1], [0, 0, 1, 1], [], []>} : vector<16x32xbf16>, vector<32x128xbf16>, vector<16x128xf32> -> vector<16x128xf32>
      %c0_85 = arith.constant 0 : index
      %c0_86 = arith.constant 0 : index
      %188 = vector.load %arg16[%c0_85, %c0_86] : memref<1x128xf32, #tpu.memory_space<vmem>>, vector<1x128xf32>
      %189 = vector.broadcast %188 : vector<1x128xf32> to vector<16x128xf32>
      %190 = arith.addf %187, %189 : vector<16x128xf32>
      %c0_87 = arith.constant 0 : index
      %c0_88 = arith.constant 0 : index
      %191 = vector.load %arg17[%c0_87, %c0_88] : memref<16x128xf32, #tpu.memory_space<vmem>>, vector<16x128xf32>
      tpu.vector_store %arg17[%c0_87, %c0_88], %190 {strides = array<i32>} : memref<16x128xf32, #tpu.memory_space<vmem>>, vector<16x128xf32>,
    } else {
    }
    return
  }
  func.func @transform_0(%arg0: i32, %arg1: i32) -> (i32, i32) {
    %c0_i32 = arith.constant 0 : i32
    %c0_i32_0 = arith.constant 0 : i32
    return %arg0, %c0_i32 : i32, i32
  }
  func.func @transform_1(%arg0: i32, %arg1: i32) -> (i32, i32, i32) {
    %c0_i32 = arith.constant 0 : i32
    %c0_i32_0 = arith.constant 0 : i32
    %c0_i32_1 = arith.constant 0 : i32
    return %arg1, %c0_i32, %c0_i32_0 : i32, i32, i32
  }
  func.func @transform_2(%arg0: i32, %arg1: i32) -> (i32, i32, i32) {
    %c0_i32 = arith.constant 0 : i32
    %c0_i32_0 = arith.constant 0 : i32
    %c0_i32_1 = arith.constant 0 : i32
    return %arg1, %c0_i32, %c0_i32_0 : i32, i32, i32
  }
  func.func @transform_3(%arg0: i32, %arg1: i32) -> (i32, i32, i32) {
    %c0_i32 = arith.constant 0 : i32
    %c0_i32_0 = arith.constant 0 : i32
    %c0_i32_1 = arith.constant 0 : i32
    return %arg1, %c0_i32, %c0_i32_0 : i32, i32, i32
  }
  func.func @transform_4(%arg0: i32, %arg1: i32) -> (i32, i32, i32) {
    %c0_i32 = arith.constant 0 : i32
    %c0_i32_0 = arith.constant 0 : i32
    %c0_i32_1 = arith.constant 0 : i32
    return %arg1, %c0_i32, %c0_i32_0 : i32, i32, i32
  }
  func.func @transform_5(%arg0: i32, %arg1: i32) -> (i32, i32, i32) {
    %c0_i32 = arith.constant 0 : i32
    %c0_i32_0 = arith.constant 0 : i32
    %c0_i32_1 = arith.constant 0 : i32
    return %arg1, %c0_i32, %c0_i32_0 : i32, i32, i32
  }
  func.func @transform_6(%arg0: i32, %arg1: i32) -> (i32, i32, i32) {
    %c0_i32 = arith.constant 0 : i32
    %c0_i32_0 = arith.constant 0 : i32
    %c0_i32_1 = arith.constant 0 : i32
    return %arg1, %c0_i32, %c0_i32_0 : i32, i32, i32
  }
  func.func @transform_7(%arg0: i32, %arg1: i32) -> (i32, i32, i32) {
    %c0_i32 = arith.constant 0 : i32
    %c0_i32_0 = arith.constant 0 : i32
    %c0_i32_1 = arith.constant 0 : i32
    return %arg1, %c0_i32, %c0_i32_0 : i32, i32, i32
  }
  func.func @transform_8(%arg0: i32, %arg1: i32) -> (i32, i32, i32) {
    %c0_i32 = arith.constant 0 : i32
    %c0_i32_0 = arith.constant 0 : i32
    %c0_i32_1 = arith.constant 0 : i32
    return %arg1, %c0_i32, %c0_i32_0 : i32, i32, i32
  }
  func.func @transform_9(%arg0: i32, %arg1: i32) -> (i32, i32, i32) {
    %c0_i32 = arith.constant 0 : i32
    %c0_i32_0 = arith.constant 0 : i32
    %c0_i32_1 = arith.constant 0 : i32
    return %arg1, %c0_i32, %c0_i32_0 : i32, i32, i32
  }
  func.func @transform_10(%arg0: i32, %arg1: i32) -> (i32, i32, i32) {
    %c0_i32 = arith.constant 0 : i32
    %c0_i32_0 = arith.constant 0 : i32
    %c0_i32_1 = arith.constant 0 : i32
    return %arg1, %c0_i32, %c0_i32_0 : i32, i32, i32
  }
  func.func @transform_11(%arg0: i32, %arg1: i32) -> (i32, i32, i32) {
    %c0_i32 = arith.constant 0 : i32
    %c0_i32_0 = arith.constant 0 : i32
    %c0_i32_1 = arith.constant 0 : i32
    return %arg1, %c0_i32, %c0_i32_0 : i32, i32, i32
  }
  func.func @transform_12(%arg0: i32, %arg1: i32) -> (i32, i32, i32) {
    %c0_i32 = arith.constant 0 : i32
    %c0_i32_0 = arith.constant 0 : i32
    %c0_i32_1 = arith.constant 0 : i32
    return %arg1, %c0_i32, %c0_i32_0 : i32, i32, i32
  }
  func.func @transform_13(%arg0: i32, %arg1: i32) -> (i32, i32) {
    %c0_i32 = arith.constant 0 : i32
    %c0_i32_0 = arith.constant 0 : i32
    %c0_i32_1 = arith.constant 0 : i32
    return %c0_i32, %c0_i32_0 : i32, i32
  }
  func.func @transform_14(%arg0: i32, %arg1: i32) -> (i32, i32) {
    %c0_i32 = arith.constant 0 : i32
    %c0_i32_0 = arith.constant 0 : i32
    %c0_i32_1 = arith.constant 0 : i32
    return %c0_i32, %c0_i32_0 : i32, i32
  }
  func.func @transform_15(%arg0: i32, %arg1: i32) -> (i32, i32) {
    %c0_i32 = arith.constant 0 : i32
    %c0_i32_0 = arith.constant 0 : i32
    return %arg0, %c0_i32 : i32, i32
  }
}

</mosaic_0001>

<bundles_post_ra>
// kernel: tpu_custom_call.1
= control target key start
LH: loop header
LB: loop body
LE: loop exit
PB: predicated region body
PF: predicated region fallthrough
CT: control target
= control target key end

     0   :  { %s5168_s0 = inlined_call_operand.vmem [shape: f32[16,32], index: 0, kind: input, shape index: {}]   ;;  %s5169_s1 = inlined_call_operand.vmem [shape: bf16[2,32,96], index: 1, kind: input, shape index: {}]   ;;  %s5170_s2 = inlined_call_operand.vmem [shape: f32[2,1,96], index: 2, kind: input, shape index: {}]   ;;  %s5171_s3 = inlined_call_operand.vmem [shape: bf16[2,32,32], index: 3, kind: input, shape index: {}]   ;;  %s5172_s4 = inlined_call_operand.vmem [shape: f32[2,1,32], index: 4, kind: input, shape index: {}]   ;;  %s5173_s5 = inlined_call_operand.vmem [shape: f32[2,1,32], index: 5, kind: input, shape index: {}]   ;;  %s5174_s6 = inlined_call_operand.vmem [shape: f32[2,1,32], index: 6, kind: input, shape index: {}]   ;;  %s5175_s7 = inlined_call_operand.vmem [shape: bf16[2,32,2048], index: 7, kind: input, shape index: {}]   ;;  %s5176_s8 = inlined_call_operand.vmem [shape: f32[2,1,2048], index: 8, kind: input, shape index: {}]   ;;  %s5177_s9 = inlined_call_operand.vmem [shape: bf16[2,2048,32], index: 9, kind: input, shape index: {}]   ;;  %s5178_s10 = inlined_call_operand.vmem [shape: f32[2,1,32], index: 10, kind: input, shape index: {}]   ;;  %s5179_s11 = inlined_call_operand.vmem [shape: f32[2,1,32], index: 11, kind: input, shape index: {}]   ;;  %s5180_s12 = inlined_call_operand.vmem [shape: f32[2,1,32], index: 12, kind: input, shape index: {}]   ;;  %s5181_s13 = inlined_call_operand.vmem [shape: bf16[32,128], index: 13, kind: input, shape index: {}]   ;;  %s5182_s14 = inlined_call_operand.vmem [shape: f32[1,128], index: 14, kind: input, shape index: {}]   ;;  %s5183_s15 = inlined_call_operand.hbm [shape: f32[16,128], index: 15, kind: output, shape index: {}]  }
   0x1   :  { %5188 = sst [smem:[#allocation10_spill]] %s5168_s0 }
   0x2   :  { %5189 = sst [smem:[#allocation11_spill]] %s5169_s1 }
   0x3   :  { %5190 = sst [smem:[#allocation12_spill]] %s5171_s3 }
   0x4   :  { %5191 = sst [smem:[#allocation13_spill]] %s5181_s13 }
   0x5   :  { %5192 = sst [smem:[#allocation14_spill]] %s5182_s14 }
   0x6   :  { %5193 = sst [smem:[#allocation15_spill]] %s5183_s15 }
   0x7   :  { %20 = vsyncpa [#allocation5], 0  ;;  %s4626_s18 = smov 0   ;;  %s4628_s19 = smov 0  }
   0x8   :  { %s4630_s20 = smov 0  }
   0x9 LB: > { %5194 = sst [smem:[#allocation7_spill]] %s4523_s19  ;;  %s35_s22 = sadd.s32 1, %s4523_s19  ;;  %s4527_s20 = sphi %s4630_s20, %s26_s20   ;;  %s4523_s19 = sphi %s4628_s19, %s5211_s19   ;;  %s4519_s18 = sphi %s4626_s18, %s5210_s18  }
   0xa   : > { %5195 = sst [smem:[#allocation8_spill]] %s4527_s20  ;;  %p36_p0 = scmp.ge.s32.totalorder %s35_s22, 2 }
   0xb   : > { %p3468_p1 = scmp.ge.s32.totalorder %s4527_s20, 1  ;;  %p556_p2 = scmp.lt.s32.totalorder %s4527_s20, 3 }
   0xc   : > { %s5213_s22 = smov (%p36_p0, %s35_s22), 0 }
   0xd   : > { %5196 = sst [smem:[#allocation9_spill]] %s5213_s22  ;;  %p557_p3 = pnand %p3468_p1, %p556_p2 }
   0xe   : > { %p650_p4 = scmp.lt.s32.totalorder (!%p557_p3), %s4519_s18, 1  ;;  %s5197_s1 = sld [smem:[#allocation11_spill]] (!%p557_p3) }
   0xf   : > { %560 = sbr.rel (%p557_p3) target bundleno = 2207 (0x89f), region = 80  ;;  %s5198_s3 = sld [smem:[#allocation12_spill]] (!%p557_p3) }
  0x10   : > { %p3478_p5 = scmp.ne.s32.totalorder (!%p557_p3), %s4519_s18, 0 }
  0x14   : > { %s4649_s23 = scalar_select %p650_p4, %s4519_s18, 1 }
  0x15   : > { %s5199_s15 = sld [smem:[#allocation10_spill]] (!%p3478_p5) }
  0x16   : > { %s4191_s24 = sshll.u32 %s4649_s23, 4  ;;  %s4193_s27 = sshll.u32 %s4649_s23, 8 }
  0x17   : > { %s654_s30 = scalar_lea.vmem %s5197_s1, %s4191_s24  ;;  %s4662_s21 = scalar_lea.vmem %s5198_s3, %s4191_s24 }
  0x18   : > { %s4680_s1 = scalar_lea.vmem %s5175_s7, %s4193_s27  ;;  %s4685_s3 = scalar_lea.vmem %s5176_s8, %s4191_s24 }
  0x19   : > { %s4194_s19 = sshll.u32 %s4649_s23, 10  ;;  %s688_s14 = scalar_lea.vmem %s5178_s10, %s4649_s23 }
  0x1a   : > { %s4695_s0 = scalar_lea.vmem %s5177_s9, %s4194_s19  ;;  %s691_s27 = scalar_lea.vmem %s5179_s11, %s4649_s23 }
  0x1b   : > { %s694_s16 = scalar_lea.vmem %s5180_s12, %s4649_s23  ;;  %700 = sbr.rel (%p3478_p5) target bundleno = 35 (0x23), region = 84 }
  0x20   : > { %v701_v0 = vld [vmem:[%s5199_s15] sm:$0xff]  ;;  %vm703_vm0 = vcmask 261120   ;;  %v702_v1 = vld [vmem:[%s5199_s15 + $0x8] sm:$0xff] }
  0x21   : > { %704 = vst.msk [vmem:[#allocation2] sm:$0xff] %vm703_vm0, %v701_v0 }
  0x22   : > { %705 = vst.msk [vmem:[#allocation2 + $0x8] sm:$0xff] %vm703_vm0, %v702_v1 }
  0x23 PF: > { %v4196_v2 = vld [vmem:[%s654_s30 + $0x8] sm:$0xff]  ;;  %v4195_v3 = vld [vmem:[%s654_s30] sm:$0xff]  ;;  %vm729_vm1 = vcmask 261120   ;;  %s5200_s20 = scalar_lea.vmem %s5170_s2, %s4649_s23  ;;  %s4529_s30 = smov 96   ;;  %vm750_vm2 = vcmask 64512   ;;  %vm1020_vm3 = vcmask 130112  }
  0x24   : > { %739 = vmatpush.bf16.msra.mxu0 %v4196_v2  ;;  %v4423_v7 = vld [vmem:[%s5200_s20] ss:$0 sm:$0xff]  ;;  %s4530_s25 = smov 120   ;;  %s4531_s28 = smov 72   ;;  %vm1163_vm4 = vcmask 195712   ;;  %vm1306_vm5 = vcmask 261312  }
  0x25   : > { %s4532_s29 = smov 104   ;;  %s4533_s24 = smov 48  }
  0x26   : > { %s4534_s17 = smov 80   ;;  %s4535_s22 = smov 56  }
  0x27   : > { %s4536_s13 = smov 112   ;;  %s4537_s26 = smov 88  }
  0x28   : > { %v4712_v4 = vld [vmem:[#allocation2] sm:$0xff]  ;;  %740 = vmatpush.bf16.msra.mxu0 %v4195_v3  ;;  %s4538_s19 = smov 64   ;;  %s4539_s20 = smov 40  }
  0x29   : > { %v4714_v5 = vld [vmem:[#allocation2 + $0x8] sm:$0xff]  ;;  %p4177_p6 = scmp.ne.s32.totalorder %s4519_s18, 1 }
  0x2a   : > { %v708_v6 = vpack.c.bf16 %v4714_v5, %v4712_v4 }
  0x2c   : > { %3487 = vmatmul.msk.bf16.vlgmr.msra.gmra.mxu0 %vm729_vm1, %v708_v6 }
  0xa9   : > { %v742_v8 = vpop.f32.mrf.mxu0 }
  0xaa   : > { %v4724_v9 = vadd.f32 %v4423_v7, %v742_v8 }
  0xac   : > { %882 = vrot.lane.b32.xlu2 %v4724_v9, %s4529_s30  ;;  %748 = vrot.lane.b32.xlu0 %v4724_v9, %s4530_s25 }
  0xb1   : > { %v744_v10 = vpop.f32.mrf.mxu0 }
  0xb2   : > { %v4728_v11 = vadd.f32 %v4423_v7, %v744_v10 }
  0xb4   : > { %910 = vrot.lane.b32.xlu1 %v4728_v11, %s4529_s30  ;;  %1025 = vrot.lane.b32.xlu2 %v4724_v9, %s4531_s28  ;;  %v4408_v50 = vpack.i.bf16 %v4728_v11, %v4724_v9  ;;  %s4540_s30 = smov 8  }
  0xb5   : > { %776 = vrot.lane.b32.xlu0 %v4728_v11, %s4530_s25  ;;  %s4541_s25 = smov 16  }
  0xbc   : > { %908 = vrot.lane.b32.xlu1 %v4728_v11, %s4532_s29  ;;  %1168 = vrot.lane.b32.xlu2 %v4724_v9, %s4533_s24 }
  0xbd   : > { %880 = vrot.lane.b32.xlu0 %v4724_v9, %s4532_s29 }
  0xc4   : > { %1023 = vrot.lane.b32.xlu1 %v4724_v9, %s4534_s17  ;;  %1051 = vrot.lane.b32.xlu2 %v4728_v11, %s4534_s17  ;;  %s5201_s17 = scalar_lea.vmem %s5172_s4, %s4649_s23 }
  0xc5   : > { %1166 = vrot.lane.b32.xlu0 %v4724_v9, %s4535_s22 }
  0xcc   : > { %1053 = vrot.lane.b32.xlu1 %v4728_v11, %s4531_s28  ;;  %s4542_s28 = smov 24  }
  0xcd   : > { %1196 = vrot.lane.b32.xlu0 %v4728_v11, %s4533_s24 }
  0xd4   : > { %1194 = vrot.lane.b32.xlu1 %v4728_v11, %s4535_s22  ;;  %s5205_s22 = sld [smem:[#allocation14_spill]] (!%p4177_p6) }
 0x106   : > { %v883_v12 = vpop.permute.xlu2 %882 }
 0x10e   : > { %v1026_v14 = vpop.permute.xlu2 %1025 }
 0x116   : > { %v1169_v18 = vpop.permute.xlu2 %1168 }
 0x11e   : > { %v749_v13 = vpop.permute.xlu0 %748  ;;  %v1052_v24 = vpop.permute.xlu2 %1051 }
 0x11f   : > { %3488 = vmatpush.xpose.msk.msra.mxu1 %vm750_vm2, %v749_v13 }
 0x122   : > { %3489 = vmatmul.msk.f32.vlgmr.msra.gmra.mxu1 %vm750_vm2, %v4724_v9 }
 0x123   : > { %3494 = vmatpush.xpose.msk.msrb.mxu1 %vm750_vm2, %v883_v12 }
 0x126   : > { %v911_v15 = vpop.permute.xlu1 %910 }
 0x127   : > { %v777_v16 = vpop.permute.xlu0 %776  ;;  %3496 = vmatpush.xpose.msk.msra.mxu2 %vm750_vm2, %v911_v15 }
 0x128   : > { %3490 = vmatpush.xpose.msk.msrb.mxu0 %vm750_vm2, %v777_v16 }
 0x12b   : > { %3500 = vmatpush.xpose.msk.msrb.mxu2 %vm750_vm2, %v1026_v14  ;;  %3491 = vmatmul.msk.f32.vlgmr.msrb.gmra.mxu0 %vm750_vm2, %v4728_v11 }
 0x12e   : > { %v909_v17 = vpop.permute.xlu1 %908 }
 0x12f   : > { %v881_v19 = vpop.permute.xlu0 %880  ;;  %3497 = vmatmul.msk.f32.vlgmr.msra.gmra.mxu2 %vm750_vm2, %v909_v17 }
 0x130   : > { %3495 = vmatmul.msk.f32.vlgmr.msrb.gmra.mxu1 %vm750_vm2, %v881_v19  ;;  %3506 = vmatpush.xpose.msk.msra.mxu2 %vm750_vm2, %v1169_v18 }
 0x136   : > { %v1024_v20 = vpop.permute.xlu1 %1023 }
 0x137   : > { %v1167_v21 = vpop.permute.xlu0 %1166  ;;  %3501 = vmatmul.msk.f32.vlgmr.msrb.gmra.mxu2 %vm750_vm2, %v1024_v20 }
 0x13e   : > { %v1054_v22 = vpop.permute.xlu1 %1053 }
 0x13f   : > { %v1197_v23 = vpop.permute.xlu0 %1196  ;;  %3502 = vmatpush.xpose.msk.msra.mxu0 %vm750_vm2, %v1054_v22  ;;  %3507 = vmatmul.msk.f32.vlgmr.msra.gmra.mxu2 %vm750_vm2, %v1167_v21 }
 0x142   : > { %3503 = vmatmul.msk.f32.vlgmr.msra.gmra.mxu0 %vm750_vm2, %v1052_v24 }
 0x143   : > { %3508 = vmatpush.xpose.msk.msrb.mxu0 %vm750_vm2, %v1197_v23 }
 0x146   : > { %v1195_v25 = vpop.permute.xlu1 %1194 }
 0x14a   : > { %3509 = vmatmul.msk.f32.vlgmr.msrb.gmra.mxu0 %vm750_vm2, %v1195_v25 }
 0x19f   : > { %v772_v26 = vpop.f32.mrf.mxu1 }
 0x1a0   : > { %v802_v27 = vmul.f32 0.35355338, %v772_v26 }
 0x1a2   : > { %v804_v28 = vsel %vm750_vm2, %v802_v27, -inf }
 0x1a3   : > { %805 = vmax.xlane.f32.xlu2 %v804_v28 }
 0x1a8   : > { %v799_v29 = vpop.f32.mrf.mxu0 }
 0x1a9   : > { %v803_v30 = vmul.f32 0.35355338, %v799_v29 }
 0x1ab   : > { %v807_v31 = vsel %vm750_vm2, %v803_v30, -inf }
 0x1ac   : > { %808 = vmax.xlane.f32.xlu0 %v807_v31 }
 0x1ad   : > { %v905_v32 = vpop.f32.mrf.mxu1 }
 0x1ae   : > { %v936_v33 = vmul.f32 0.35355338, %v905_v32 }
 0x1b0   : > { %v938_v34 = vsel %vm750_vm2, %v936_v33, -inf }
 0x1b1   : > { %939 = vmax.xlane.f32.xlu1 %v938_v34 }
 0x1b2   : > { %v933_v35 = vpop.f32.mrf.mxu2 }
 0x1b3   : > { %v937_v36 = vmul.f32 0.35355338, %v933_v35 }
 0x1b5   : > { %v941_v37 = vsel %vm750_vm2, %v937_v36, -inf }
 0x1b6   : > { %942 = vmax.xlane.f32.xlu2 %v941_v37 }
 0x1ba   : > { %v1048_v38 = vpop.f32.mrf.mxu2 }
 0x1bb   : > { %v1079_v39 = vmul.f32 0.35355338, %v1048_v38 }
 0x1bd   : > { %v1081_v40 = vsel %vm750_vm2, %v1079_v39, -inf }
 0x1be   : > { %1082 = vmax.xlane.f32.xlu2 %v1081_v40 }
 0x1bf   : > { %v1076_v41 = vpop.f32.mrf.mxu0 }
 0x1c0   : > { %v1080_v42 = vmul.f32 0.35355338, %v1076_v41 }
 0x1c2   : > { %v1191_v43 = vpop.f32.mrf.mxu2  ;;  %v1084_v44 = vsel %vm750_vm2, %v1080_v42, -inf }
 0x1c3   : > { %v1222_v45 = vmul.f32 0.35355338, %v1191_v43  ;;  %1085 = vmax.xlane.f32.xlu0 %v1084_v44 }
 0x1c5   : > { %v1224_v46 = vsel %vm750_vm2, %v1222_v45, -inf }
 0x1c6   : > { %1225 = vmax.xlane.f32.xlu1 %v1224_v46 }
 0x1c7   : > { %v1219_v47 = vpop.f32.mrf.mxu0 }
 0x1c8   : > { %v4767_v48 = vmul.f32 0.35355338, %v1219_v47 }
 0x1ca   : > { %v1227_v49 = vsel %vm750_vm2, %v4767_v48, -inf }
 0x1cb   : > { %1228 = vmax.xlane.f32.xlu2 %v1227_v49 }
 0x1e3   : > { %4409 = vrot.lane.b32.xlu2 %v4408_v50, %s4536_s13  ;;  %s5202_s13 = scalar_lea.vmem %s5173_s5, %s4649_s23 }
 0x216   : > { %v806_v51 = vpop.xlane.xlu2 %805 }
 0x217   : > { %v810_v52 = vsub.f32 %v802_v27, %v806_v51 }
 0x219   : > { %v812_v53 = vmul.f32 1.442695, %v810_v52 }
 0x21b   : > { %4430 = vpow2.f32 %v812_v53 }
 0x21f   : > { %v809_v54 = vpop.xlane.xlu0 %808 }
 0x220   : > { %v811_v55 = vsub.f32 %v803_v30, %v809_v54 }
 0x221   : > { %v4773_v56 = vpop.eup %4430 }
 0x222   : > { %v814_v57 = vmul.f32 1.442695, %v811_v55  ;;  %v816_v58 = vsel %vm750_vm2, %v4773_v56, 0.0 }
 0x223   : > { %817 = vadd.xlane.f32.xlu0 %v816_v58 }
 0x224   : > { %4432 = vpow2.f32 %v814_v57  ;;  %v940_v59 = vpop.xlane.xlu1 %939 }
 0x225   : > { %v944_v60 = vsub.f32 %v936_v33, %v940_v59 }
 0x227   : > { %v946_v61 = vmul.f32 1.442695, %v944_v60 }
 0x229   : > { %4434 = vpow2.f32 %v946_v61  ;;  %v943_v62 = vpop.xlane.xlu2 %942 }
 0x22a   : > { %v4433_v63 = vpop.eup %4432  ;;  %v945_v0 = vsub.f32 %v937_v36, %v943_v62 }
 0x22b   : > { %v819_v1 = vsel %vm750_vm2, %v4433_v63, 0.0 }
 0x22c   : > { %v948_v2 = vmul.f32 1.442695, %v945_v0  ;;  %820 = vadd.xlane.f32.xlu1 %v819_v1 }
 0x22e   : > { %4436 = vpow2.f32 %v948_v2 }
 0x22f   : > { %v4778_v3 = vpop.eup %4434 }
 0x230   : > { %v950_v6 = vsel %vm750_vm2, %v4778_v3, 0.0 }
 0x231   : > { %951 = vadd.xlane.f32.xlu0 %v950_v6  ;;  %v1083_v10 = vpop.xlane.xlu2 %1082 }
 0x232   : > { %v1087_v14 = vsub.f32 %v1079_v39, %v1083_v10 }
 0x234   : > { %v4782_v7 = vpop.eup %4436  ;;  %v1089_v19 = vmul.f32 1.442695, %v1087_v14 }
 0x235   : > { %v953_v8 = vsel %vm750_vm2, %v4782_v7, 0.0 }
 0x236   : > { %954 = vadd.xlane.f32.xlu1 %v953_v8  ;;  %v1086_v12 = vpop.xlane.xlu0 %1085 }
 0x237   : > { %v1088_v13 = vsub.f32 %v1080_v42, %v1086_v12 }
 0x239   : > { %v1091_v15 = vmul.f32 1.442695, %v1088_v13  ;;  %v1226_v16 = vpop.xlane.xlu1 %1225 }
 0x23a   : > { %v1230_v17 = vsub.f32 %v1222_v45, %v1226_v16  ;;  %v4197_v16 = vld [vmem:[%s4662_s21] sm:$0xff] }
 0x23b   : > { %4438 = vpow2.f32 %v1091_v15  ;;  %v4198_v15 = vld [vmem:[%s4662_s21 + $0x8] sm:$0xff] }
 0x23c   : > { %v1232_v18 = vmul.f32 1.442695, %v1230_v17  ;;  %1341 = vmatpush.bf16.msrb.mxu2 %v4198_v15  ;;  %v4217_v15 = vld [vmem:[%s4680_s1 + $0x94] sm:$0xf] }
 0x23e   : > { %4440 = vpow2.f32 %v1232_v18  ;;  %v1229_v20 = vpop.xlane.xlu2 %1228 }
 0x23f   : > { %4442 = vpow2.f32 %v1089_v19  ;;  %v1231_v30 = vsub.f32 %v4767_v48, %v1229_v20 }
 0x240   : > { %1342 = vmatpush.bf16.msrb.mxu2 %v4197_v16 }
 0x241   : > { %v4786_v21 = vpop.eup %4438  ;;  %v1234_v31 = vmul.f32 1.442695, %v1231_v30 }
 0x242   : > { %v1096_v22 = vsel %vm750_vm2, %v4786_v21, 0.0 }
 0x243   : > { %1097 = vadd.xlane.f32.xlu0 %v1096_v22  ;;  %4444 = vpow2.f32 %v1234_v31 }
 0x244   : > { %v4790_v23 = vpop.eup %4440 }
 0x245   : > { %v1236_v24 = vsel %vm750_vm2, %v4790_v23, 0.0  ;;  %v4443_v26 = vpop.eup %4442 }
 0x246   : > { %1237 = vadd.xlane.f32.xlu2 %v1236_v24  ;;  %v4410_v25 = vpop.permute.xlu2 %4409  ;;  %v1093_v29 = vsel %vm750_vm2, %v4443_v26, 0.0 }
 0x247   : > { %v4411_v27 = vunpack.i.l.bf16 %v4410_v25  ;;  %v4412_v28 = vunpack.i.h.bf16 %v4410_v25 }
 0x249   : > { %847 = vmatpush.msra.mxu3 %v4411_v27  ;;  %v4445_v32 = vpop.eup %4444 }
 0x24a   : > { %v1239_v33 = vsel %vm750_vm2, %v4445_v32, 0.0 }
 0x24b   : > { %873 = vmatpush.msrb.mxu3 %v4412_v28  ;;  %1094 = vadd.xlane.f32.xlu0 %v1093_v29 }
 0x24f   : > { %4414 = vrot.lane.b32.xlu1 %v4408_v50, %s4537_s26 }
 0x25f   : > { %4419 = vrot.lane.b32.xlu0 %v4408_v50, %s4538_s19 }
 0x267   : > { %1246 = vrot.lane.b32.xlu0 %v4724_v9, %s4539_s20 }
 0x26f   : > { %1272 = vrot.lane.b32.xlu0 %v4728_v11, %s4539_s20  ;;  %s5203_s20 = scalar_lea.vmem %s5174_s6, %s4649_s23 }
 0x279   : > { %1240 = vadd.xlane.f32.xlu1 %v1239_v33 }
 0x296   : > { %v818_v34 = vpop.xlane.xlu0 %817 }
 0x297   : > { %4446 = vrcp.f32 %v818_v34 }
 0x29d   : > { %v4447_v35 = vpop.eup %4446 }
 0x29e   : > { %v824_v36 = vmul.f32 %v4447_v35, %v4773_v56 }
 0x29f   : > { %v821_v37 = vpop.xlane.xlu1 %820 }
 0x2a0   : > { %4448 = vrcp.f32 %v821_v37  ;;  %3492 = vmatmul.msk.f32.vlgmr.msra.gmra.mxu3 %vm750_vm2, %v824_v36 }
 0x2a4   : > { %v952_v9 = vpop.xlane.xlu0 %951 }
 0x2a5   : > { %4450 = vrcp.f32 %v952_v9 }
 0x2a6   : > { %v4449_v38 = vpop.eup %4448 }
 0x2a7   : > { %v825_v39 = vmul.f32 %v4449_v38, %v4433_v63 }
 0x2a9   : > { %3493 = vmatmul.msk.f32.vlgmr.msrb.gmra.mxu3 %vm750_vm2, %v825_v39  ;;  %v955_v40 = vpop.xlane.xlu1 %954 }
 0x2aa   : > { %4452 = vrcp.f32 %v955_v40 }
 0x2ab   : > { %v4451_v41 = vpop.eup %4450 }
 0x2ac   : > { %v958_v46 = vmul.f32 %v4451_v41, %v4778_v3 }
 0x2b0   : > { %v4453_v42 = vpop.eup %4452 }
 0x2b1   : > { %v959_v47 = vmul.f32 %v4453_v42, %v4782_v7 }
 0x2b6   : > { %v1098_v11 = vpop.xlane.xlu0 %1097 }
 0x2b7   : > { %4454 = vrcp.f32 %v1098_v11 }
 0x2b9   : > { %v1238_v50 = vpop.xlane.xlu2 %1237 }
 0x2bd   : > { %v4455_v49 = vpop.eup %4454 }
 0x2be   : > { %v1095_v48 = vpop.xlane.xlu0 %1094  ;;  %v1102_v55 = vmul.f32 %v4455_v49, %v4786_v21  ;;  %v3589_v49 = vld [vmem:[%s4680_s1 + $0xc0] sm:$0xf0] }
 0x2bf   : > { %4456 = vrcp.f32 %v1095_v48 }
 0x2c0   : > { %4458 = vrcp.f32 %v1238_v50  ;;  %v3595_v50 = vld [vmem:[%s4680_s1 + $0x88] sm:$0xf] }
 0x2c1   : > { %v4415_v43 = vpop.permute.xlu1 %4414 }
 0x2c2   : > { %v4417_v44 = vunpack.i.h.bf16 %v4415_v43  ;;  %v4416_v45 = vunpack.i.l.bf16 %v4415_v43 }
 0x2c4   : > { %981 = vmatpush.msra.mxu3 %v4416_v45  ;;  %1007 = vmatpush.msra.mxu1 %v4417_v44  ;;  %v3587_v45 = vld [vmem:[%s4680_s1 + $0x80] sm:$0xf] }
 0x2c5   : > { %3498 = vmatmul.msk.f32.vlgmr.msra.gmra.mxu3 %vm750_vm2, %v958_v46  ;;  %3499 = vmatmul.msk.f32.vlgmr.msra.gmra.mxu1 %vm750_vm2, %v959_v47  ;;  %v4457_v51 = vpop.eup %4456  ;;  %v4223_v46 = vld [vmem:[%s4680_s1 + $0xbc] sm:$0xf0]  ;;  %v4215_v47 = vld [vmem:[%s4680_s1 + $0x84] sm:$0xf] }
 0x2c6   : > { %v1101_v56 = vmul.f32 %v4457_v51, %v4443_v26  ;;  %v4459_v57 = vpop.eup %4458  ;;  %v3588_v48 = vor.u32 %v4223_v46, %v3587_v45  ;;  %v4224_v51 = vld [vmem:[%s4680_s1 + $0xc4] sm:$0xf0] }
 0x2c7   : > { %v1244_v59 = vmul.f32 %v4459_v57, %v4790_v23  ;;  %v4424_v23 = vld [vmem:[%s5201_s17] ss:$0 sm:$0xff] }
 0x2c8   : > { %1652 = vmatpush.bf16.msra.mxu0 %v3588_v48 }
 0x2d1   : > { %v4420_v52 = vpop.permute.xlu0 %4419 }
 0x2d2   : > { %v4422_v53 = vunpack.i.h.bf16 %v4420_v52  ;;  %v4421_v54 = vunpack.i.l.bf16 %v4420_v52 }
 0x2d4   : > { %1124 = vmatpush.msrb.mxu3 %v4421_v54  ;;  %1150 = vmatpush.msrb.mxu1 %v4422_v53  ;;  %v3592_v53 = vor.u32 %v4215_v47, %v3589_v49  ;;  %v3596_v54 = vor.u32 %v4224_v51, %v3595_v50  ;;  %v4425_v50 = vld [vmem:[%s5202_s13] ss:$0 sm:$0xff] }
 0x2d5   : > { %3504 = vmatmul.msk.f32.vlgmr.msrb.gmra.mxu3 %vm750_vm2, %v1101_v56  ;;  %3505 = vmatmul.msk.f32.vlgmr.msrb.gmra.mxu1 %vm750_vm2, %v1102_v55  ;;  %v4216_v55 = vld [vmem:[%s4680_s1 + $0x8c] sm:$0xf] }
 0x2d6   : > { %v3597_v56 = vld [vmem:[%s4680_s1 + $0xc8] sm:$0xf0] }
 0x2d9   : > { %v1247_v58 = vpop.permute.xlu0 %1246 }
 0x2da   : > { %1267 = vmatpush.msra.mxu3 %v1247_v58  ;;  %v3600_v58 = vor.u32 %v4216_v55, %v3597_v56 }
 0x2dc   : > { %1666 = vmatpush.bf16.msrb.mxu3 %v3592_v53  ;;  %1694 = vmatpush.bf16.msra.mxu2 %v3600_v58  ;;  %v3619_v58 = vld [vmem:[%s4680_s1 + $0xa0] sm:$0xf] }
 0x2dd   : > { %3510 = vmatmul.msk.f32.vlgmr.msra.gmra.mxu3 %vm750_vm2, %v1244_v59  ;;  %v3523_v59 = vld [vmem:[%s4680_s1] sm:$0xf] }
 0x2e1   : > { %v1273_v60 = vpop.permute.xlu0 %1272 }
 0x2e2   : > { %1293 = vmatpush.msra.mxu1 %v1273_v60  ;;  %v4207_v60 = vld [vmem:[%s4680_s1 + $0x3c] sm:$0xf0] }
 0x2e4   : > { %1680 = vmatpush.bf16.msrb.mxu1 %v3596_v54  ;;  %v4426_v54 = vld [vmem:[%s5203_s20] ss:$0 sm:$0xff] }
 0x2ec   : > { %v1241_v61 = vpop.xlane.xlu1 %1240 }
 0x2ed   : > { %4460 = vrcp.f32 %v1241_v61  ;;  %v4199_v61 = vld [vmem:[%s4680_s1 + $0x4] sm:$0xf] }
 0x2f3   : > { %v4461_v62 = vpop.eup %4460 }
 0x2f4   : > { %v1245_v63 = vmul.f32 %v4461_v62, %v4445_v32  ;;  %v4543_v32 = vmov 32.0  }
 0x2f5   : > { %4462 = vrcp.f32 %v4543_v32 }
 0x2f6   : > { %3511 = vmatmul.msk.f32.vlgmr.msra.gmra.mxu1 %vm750_vm2, %v1245_v63  ;;  %v3524_v63 = vor.u32 %v4207_v60, %v3523_v59  ;;  %v4219_v59 = vld [vmem:[%s4680_s1 + $0xa4] sm:$0xf] }
 0x2f7   : > { %v3621_v60 = vld [vmem:[%s4680_s1 + $0xe0] sm:$0xf0] }
 0x2f8   : > { %1653 = vmatpush.bf16.msra.mxu0 %v3524_v63 }
 0x2fb   : > { %v4463_v33 = vpop.eup %4462 }
 0x2fc   : > { %v1360_v34 = vmul.f32 32.0, %v4463_v33  ;;  %vm1364_vm6 = vweird.f32 %v4463_v33 }
 0x2fe   : > { %v1361_v35 = vsub.f32 1.0, %v1360_v34  ;;  %v3547_v34 = vld [vmem:[%s4680_s1 + $0x18] sm:$0xf] }
 0x300   : > { %v1362_v36 = vmul.f32 %v4463_v33, %v1361_v35  ;;  %v4210_v35 = vld [vmem:[%s4680_s1 + $0x54] sm:$0xf0] }
 0x302   : > { %v1363_v37 = vadd.f32 %v4463_v33, %v1362_v36 }
 0x323   : > { %v849_v0 = vpop.f32.mrf.mxu3 }
 0x324   : > { %878 = vst.msk [vmem:[#allocation3] sm:$0xff] %vm750_vm2, %v849_v0  ;;  %v3525_v0 = vld [vmem:[%s4680_s1 + $0x40] sm:$0xf0] }
 0x32c   : > { %v875_v1 = vpop.f32.mrf.mxu3 }
 0x32d   : > { %879 = vst.msk [vmem:[#allocation3 + $0x8] sm:$0xff] %vm750_vm2, %v875_v1  ;;  %v3531_v1 = vld [vmem:[%s4680_s1 + $0x8] sm:$0xf] }
 0x342   : > { %v1009_v2 = vpop.f32.mrf.mxu1 }
 0x343   : > { %1016 = vrot.lane.b32.xlu2 %v1009_v2, %s4540_s30  ;;  %v3528_v2 = vor.u32 %v4199_v61, %v3525_v0  ;;  %v3627_v61 = vld [vmem:[%s4680_s1 + $0xa8] sm:$0xf] }
 0x344   : > { %v4228_v0 = vld [vmem:[%s4680_s1 + $0xe4] sm:$0xf0] }
 0x345   : > { %1667 = vmatpush.bf16.msrb.mxu3 %v3528_v2 }
 0x348   : > { %v983_v3 = vpop.f32.mrf.mxu3 }
 0x349   : > { %1014 = vrot.lane.b32.xlu0 %v983_v3, %s4540_s30  ;;  %v4208_v3 = vld [vmem:[%s4680_s1 + $0x44] sm:$0xf0] }
 0x352   : > { %v1152_v6 = vpop.f32.mrf.mxu1 }
 0x353   : > { %1159 = vrot.lane.b32.xlu1 %v1152_v6, %s4541_s25  ;;  %v4200_v6 = vld [vmem:[%s4680_s1 + $0xc] sm:$0xf] }
 0x358   : > { %v1126_v7 = vpop.f32.mrf.mxu3 }
 0x359   : > { %1157 = vrot.lane.b32.xlu0 %v1126_v7, %s4541_s25  ;;  %v3533_v7 = vld [vmem:[%s4680_s1 + $0x48] sm:$0xf0] }
 0x360   : > { %v1269_v8 = vpop.f32.mrf.mxu3 }
 0x361   : > { %1300 = vrot.lane.b32.xlu0 %v1269_v8, %s4542_s28  ;;  %v3532_v8 = vor.u32 %v4208_v3, %v3531_v1  ;;  %v4220_v1 = vld [vmem:[%s4680_s1 + $0xac] sm:$0xf] }
 0x363   : > { %1681 = vmatpush.bf16.msrb.mxu1 %v3532_v8  ;;  %v4211_v8 = vld [vmem:[%s4680_s1 + $0x5c] sm:$0xf0] }
 0x373   : > { %v1295_v10 = vpop.f32.mrf.mxu1 }
 0x374   : > { %1302 = vrot.lane.b32.xlu0 %v1295_v10, %s4542_s28  ;;  %v3536_v10 = vor.u32 %v4200_v6, %v3533_v7  ;;  %v3624_v6 = vor.u32 %v4219_v59, %v3621_v60  ;;  %v3555_v7 = vld [vmem:[%s4680_s1 + $0x20] sm:$0xf] }
 0x375   : > { %v4243_v59 = vld [vmem:[%s4695_s0 + $0x60] sm:$0xff] }
 0x376   : > { %1695 = vmatpush.bf16.msra.mxu2 %v3536_v10  ;;  %v3628_v10 = vor.u32 %v4228_v0, %v3627_v61  ;;  %v4259_v60 = vld [vmem:[%s4695_s0 + $0xe0] sm:$0xff]  ;;  %v4234_v61 = vld [vmem:[%s4695_s0 + $0x18] sm:$0xff] }
 0x377   : > { %v4250_v0 = vld [vmem:[%s4695_s0 + $0x98] sm:$0xff] }
 0x39d   : > { %v1017_v12 = vpop.permute.xlu2 %1016 }
 0x39e   : > { %1022 = vst.msk [vmem:[#allocation3 + $0x8] sm:$0xff] %vm1020_vm3, %v1017_v12 }
 0x3bb   : > { %v1015_v13 = vpop.permute.xlu0 %1014 }
 0x3bc   : > { %1021 = vst.msk [vmem:[#allocation3] sm:$0xff] %vm1020_vm3, %v1015_v13  ;;  %v3603_v13 = vld [vmem:[%s4680_s1 + $0x90] sm:$0xf] }
 0x3c5   : > { %v1160_v14 = vpop.permute.xlu1 %1159 }
 0x3c6   : > { %1165 = vst.msk [vmem:[#allocation3 + $0x8] sm:$0xff] %vm1163_vm4, %v1160_v14  ;;  %v4225_v14 = vld [vmem:[%s4680_s1 + $0xcc] sm:$0xf0] }
 0x3cb   : > { %v1158_v17 = vpop.permute.xlu0 %1157 }
 0x3cc   : > { %1164 = vst.msk [vmem:[#allocation3] sm:$0xff] %vm1163_vm4, %v1158_v17  ;;  %v3604_v17 = vor.u32 %v4225_v14, %v3603_v13  ;;  %v4203_v13 = vld [vmem:[%s4680_s1 + $0x24] sm:$0xf] }
 0x3cd   : > { %v3557_v14 = vld [vmem:[%s4680_s1 + $0x60] sm:$0xf0] }
 0x3ce   : > { %1708 = vmatpush.bf16.msrb.mxu0 %v3604_v17  ;;  %v4204_v17 = vld [vmem:[%s4680_s1 + $0x2c] sm:$0xf] }
 0x3d3   : > { %v1301_v18 = vpop.permute.xlu0 %1300 }
 0x3d4   : > { %1307 = vst.msk [vmem:[#allocation3] sm:$0xff] %vm1306_vm5, %v1301_v18  ;;  %v3605_v18 = vld [vmem:[%s4680_s1 + $0xd0] sm:$0xf0] }
 0x3db   : > { %v1309_v20 = vld [vmem:[#allocation3] sm:$0xff] }
 0x3e6   : > { %v1303_v19 = vpop.permute.xlu0 %1302 }
 0x3e7   : > { %1308 = vst.msk [vmem:[#allocation3 + $0x8] sm:$0xff] %vm1306_vm5, %v1303_v19  ;;  %v3611_v19 = vld [vmem:[%s4680_s1 + $0x98] sm:$0xf] }
 0x3ee   : > { %v1310_v21 = vld [vmem:[#allocation3 + $0x8] sm:$0xff] }
 0x3ef   : > { %v1311_v22 = vpack.c.bf16 %v1310_v21, %v1309_v20  ;;  %v4226_v20 = vld [vmem:[%s4680_s1 + $0xd4] sm:$0xf0]  ;;  %v3608_v21 = vor.u32 %v4217_v15, %v3605_v18  ;;  %v3563_v15 = vld [vmem:[%s4680_s1 + $0x28] sm:$0xf]  ;;  %v3565_v18 = vld [vmem:[%s4680_s1 + $0x68] sm:$0xf0] }
 0x3f1   : > { %3520 = vmatmul.msk.bf16.vlgmr.msrb.gmra.mxu2 %vm729_vm1, %v1311_v22  ;;  %v3612_v22 = vor.u32 %v4226_v20, %v3611_v19  ;;  %1722 = vmatpush.bf16.msra.mxu3 %v3608_v21  ;;  %v3556_v19 = vor.u32 %v4211_v8, %v3555_v7  ;;  %v3560_v20 = vor.u32 %v4203_v13, %v3557_v14  ;;  %v4241_v7 = vld [vmem:[%s4695_s0 + $0x50] sm:$0xff]  ;;  %v4256_v13 = vld [vmem:[%s4695_s0 + $0xc8] sm:$0xff]  ;;  %v4231_v14 = vld [vmem:[%s4695_s0] sm:$0xff] }
 0x3f2   : > { %v4257_v8 = vld [vmem:[%s4695_s0 + $0xd0] sm:$0xff] }
 0x3f3   : > { %1736 = vmatpush.bf16.msra.mxu1 %v3612_v22  ;;  %v3568_v22 = vor.u32 %v4204_v17, %v3565_v18  ;;  %v4286_v17 = vld [vmem:[%s4695_s0 + $0x1b8] sm:$0xff]  ;;  %v4239_v18 = vld [vmem:[%s4695_s0 + $0x40] sm:$0xff] }
 0x474   : > { %v1344_v24 = vpop.f32.mrf.mxu2 }
 0x475   : > { %v1345_v25 = vadd.f32 %v4424_v23, %v1344_v24  ;;  %v3613_v24 = vld [vmem:[%s4680_s1 + $0xd8] sm:$0xf0] }
 0x477   : > { %v1349_v26 = vadd.f32 %v1345_v25, %v4712_v4  ;;  %v4828_v4 = vsel %vm1364_vm6, %v4463_v33, %v1363_v37  ;;  %v3539_v25 = vld [vmem:[%s4680_s1 + $0x10] sm:$0xf]  ;;  %v3541_v33 = vld [vmem:[%s4680_s1 + $0x50] sm:$0xf0]  ;;  %v3548_v37 = vor.u32 %v4210_v35, %v3547_v34 }
 0x478   : > { %v4213_v34 = vld [vmem:[%s4680_s1 + $0x6c] sm:$0xf0] }
 0x479   : > { %v1353_v27 = vsel %vm729_vm1, %v1349_v26, 0.0  ;;  %1737 = vmatpush.bf16.msra.mxu1 %v3548_v37  ;;  %v4205_v37 = vld [vmem:[%s4680_s1 + $0x34] sm:$0xf] }
 0x47a   : > { %1354 = vadd.xlane.f32.xlu2 %v1353_v27 }
 0x47c   : > { %v1346_v28 = vpop.f32.mrf.mxu2 }
 0x47d   : > { %v1347_v29 = vadd.f32 %v4424_v23, %v1346_v28  ;;  %v4218_v23 = vld [vmem:[%s4680_s1 + $0x9c] sm:$0xf] }
 0x47e   : > { %v3616_v28 = vor.u32 %v4218_v23, %v3613_v24  ;;  %v3635_v23 = vld [vmem:[%s4680_s1 + $0xb0] sm:$0xf] }
 0x47f   : > { %v1350_v30 = vadd.f32 %v1347_v29, %v4714_v5  ;;  %v4209_v29 = vld [vmem:[%s4680_s1 + $0x4c] sm:$0xf0] }
 0x480   : > { %v3540_v32 = vor.u32 %v4209_v29, %v3539_v25  ;;  %1750 = vmatpush.bf16.msrb.mxu2 %v3616_v28  ;;  %v4229_v24 = vld [vmem:[%s4680_s1 + $0xec] sm:$0xf0]  ;;  %v4221_v25 = vld [vmem:[%s4680_s1 + $0xb4] sm:$0xf]  ;;  %v4230_v28 = vld [vmem:[%s4680_s1 + $0xf4] sm:$0xf0] }
 0x481   : > { %v1356_v31 = vsel %vm729_vm1, %v1350_v30, 0.0  ;;  %v4222_v29 = vld [vmem:[%s4680_s1 + $0xbc] sm:$0xf] }
 0x482   : > { %1357 = vadd.xlane.f32.xlu0 %v1356_v31  ;;  %1709 = vmatpush.bf16.msrb.mxu0 %v3540_v32 }
 0x4ed   : > { %v1355_v38 = vpop.xlane.xlu2 %1354 }
 0x4ee   : > { %v1366_v5 = vmul.f32 %v4828_v4, %v1355_v38  ;;  %v4202_v38 = vld [vmem:[%s4680_s1 + $0x1c] sm:$0xf] }
 0x4f0   : > { %v4831_v39 = vsub.f32 %v1349_v26, %v1366_v5  ;;  %v3549_v5 = vld [vmem:[%s4680_s1 + $0x58] sm:$0xf0] }
 0x4f2   : > { %v1370_v9 = vmul.f32 %v4831_v39, %v4831_v39 }
 0x4f4   : > { %v1372_v40 = vsel %vm729_vm1, %v1370_v9, 0.0 }
 0x4f5   : > { %v1358_v11 = vpop.xlane.xlu0 %1357  ;;  %1373 = vadd.xlane.f32.xlu1 %v1372_v40  ;;  %v3552_v40 = vor.u32 %v4202_v38, %v3549_v5  ;;  %v3573_v38 = vld [vmem:[%s4680_s1 + $0x70] sm:$0xf0]  ;;  %v3579_v5 = vld [vmem:[%s4680_s1 + $0x38] sm:$0xf] }
 0x4f6   : > { %v1367_v41 = vmul.f32 %v4828_v4, %v1358_v11 }
 0x4f7   : > { %1751 = vmatpush.bf16.msrb.mxu2 %v3552_v40  ;;  %v4206_v40 = vld [vmem:[%s4680_s1 + $0x3c] sm:$0xf] }
 0x4f8   : > { %v4837_v42 = vsub.f32 %v1350_v30, %v1367_v41  ;;  %v4201_v30 = vld [vmem:[%s4680_s1 + $0x14] sm:$0xf] }
 0x4f9   : > { %v3544_v36 = vor.u32 %v4201_v30, %v3541_v33  ;;  %v3645_v30 = vld [vmem:[%s4680_s1 + $0xf8] sm:$0xf0]  ;;  %v3571_v33 = vld [vmem:[%s4680_s1 + $0x30] sm:$0xf] }
 0x4fa   : > { %v1371_v43 = vmul.f32 %v4837_v42, %v4837_v42 }
 0x4fb   : > { %1723 = vmatpush.bf16.msra.mxu3 %v3544_v36  ;;  %v3648_v36 = vor.u32 %v4222_v29, %v3645_v30  ;;  %v4283_v29 = vld [vmem:[%s4695_s0 + $0x1a0] sm:$0xff]  ;;  %v4276_v30 = vld [vmem:[%s4695_s0 + $0x168] sm:$0xff] }
 0x4fc   : > { %v1375_v44 = vsel %vm729_vm1, %v1371_v43, 0.0 }
 0x4fd   : > { %1376 = vadd.xlane.f32.xlu2 %v1375_v44 }
 0x568   : > { %v1374_v52 = vpop.xlane.xlu1 %1373 }
 0x569   : > { %v1378_v57 = vmul.f32 %v1374_v52, %v4828_v4 }
 0x56b   : > { %v4854_v62 = vadd.f32 1e-05, %v1378_v57 }
 0x56d   : > { %4464 = vrsqrt.f32 %v4854_v62  ;;  %vm1388_vm8 = vweird.f32 %v4854_v62 }
 0x570   : > { %v1377_v12 = vpop.xlane.xlu2 %1376 }
 0x571   : > { %v1379_v16 = vmul.f32 %v1377_v12, %v4828_v4 }
 0x573   : > { %v4465_v26 = vpop.eup %4464  ;;  %v1381_v27 = vadd.f32 1e-05, %v1379_v16  ;;  %v4212_v16 = vld [vmem:[%s4680_s1 + $0x64] sm:$0xf0] }
 0x574   : > { %v1383_v31 = vmul.f32 %v4465_v26, %v4854_v62  ;;  %vm1389_vm7 = vweird.f32 %v4465_v26  ;;  %v3564_v21 = vor.u32 %v4212_v16, %v3563_v15  ;;  %v4247_v15 = vld [vmem:[%s4695_s0 + $0x80] sm:$0xff]  ;;  %v4270_v16 = vld [vmem:[%s4695_s0 + $0x138] sm:$0xff] }
 0x575   : > { %4466 = vrsqrt.f32 %v1381_v27  ;;  %vm1390_vm9 = vmor %vm1388_vm8, %vm1389_vm7  ;;  %vm1398_vm11 = vweird.f32 %v1381_v27 }
 0x576   : > { %v1384_v9 = vmul.f32 %v4465_v26, %v1383_v31  ;;  %v3636_v31 = vor.u32 %v4229_v24, %v3635_v23  ;;  %v4285_v23 = vld [vmem:[%s4695_s0 + $0x1b0] sm:$0xff] }
 0x577   : > { %v4277_v24 = vld [vmem:[%s4695_s0 + $0x170] sm:$0xff] }
 0x578   : > { %v1385_v11 = vmul.f32 0.5, %v1384_v9  ;;  %v4214_v9 = vld [vmem:[%s4680_s1 + $0x74] sm:$0xf0] }
 0x57a   : > { %v1386_v41 = vsub.f32 1.5, %v1385_v11  ;;  %v3581_v11 = vld [vmem:[%s4680_s1 + $0x78] sm:$0xf0] }
 0x57b   : > { %v4467_v43 = vpop.eup %4466 }
 0x57c   : > { %v1387_v44 = vmul.f32 %v4465_v26, %v1386_v41  ;;  %v1393_v45 = vmul.f32 %v4467_v43, %v1381_v27  ;;  %vm1399_vm10 = vweird.f32 %v4467_v43  ;;  %v3643_v27 = vld [vmem:[%s4680_s1 + $0xb8] sm:$0xf]  ;;  %v3572_v41 = vor.u32 %v4213_v34, %v3571_v33  ;;  %v4275_v34 = vld [vmem:[%s4695_s0 + $0x160] sm:$0xff] }
 0x57d   : > { %vm1400_vm12 = vmor %vm1398_vm11, %vm1399_vm10  ;;  %v3644_v35 = vor.u32 %v4230_v28, %v3643_v27  ;;  %v4284_v27 = vld [vmem:[%s4695_s0 + $0x1a8] sm:$0xff]  ;;  %v4267_v28 = vld [vmem:[%s4695_s0 + $0x120] sm:$0xff] }
 0x57e   : > { %v1394_v46 = vmul.f32 %v4467_v43, %v1393_v45  ;;  %v1391_v47 = vsel %vm1390_vm9, %v4465_v26, %v1387_v44  ;;  %v3637_v26 = vld [vmem:[%s4680_s1 + $0xf0] sm:$0xf0]  ;;  %v3580_v44 = vor.u32 %v4214_v9, %v3579_v5  ;;  %v3584_v45 = vor.u32 %v4206_v40, %v3581_v11  ;;  %v4282_v33 = vld [vmem:[%s4695_s0 + $0x198] sm:$0xff]  ;;  %v4264_v9 = vld [vmem:[%s4695_s0 + $0x108] sm:$0xff] }
 0x57f   : > { %v1402_v51 = vmul.f32 %v1391_v47, %v4831_v39  ;;  %v4227_v39 = vld [vmem:[%s4680_s1 + $0xdc] sm:$0xf0]  ;;  %v3640_v32 = vor.u32 %v4221_v25, %v3637_v26  ;;  %v4254_v47 = vld [vmem:[%s4695_s0 + $0xb8] sm:$0xff]  ;;  %v4293_v25 = vld [vmem:[%s4695_s0 + $0x1f0] sm:$0xff] }
 0x580   : > { %v1395_v48 = vmul.f32 0.5, %v1394_v46  ;;  %v3620_v3 = vor.u32 %v4227_v39, %v3619_v58  ;;  %v4238_v46 = vld [vmem:[%s4695_s0 + $0x38] sm:$0xff]  ;;  %v4235_v58 = vld [vmem:[%s4695_s0 + $0x20] sm:$0xff]  ;;  %v4268_v26 = vld [vmem:[%s4695_s0 + $0x128] sm:$0xff] }
 0x581   : > { %v1407_v55 = vmul.f32 %v4425_v50, %v1402_v51  ;;  %v4253_v51 = vld [vmem:[%s4695_s0 + $0xb0] sm:$0xff]  ;;  %v4251_v39 = vld [vmem:[%s4695_s0 + $0xa0] sm:$0xff]  ;;  %v4290_v5 = vld [vmem:[%s4695_s0 + $0x1d8] sm:$0xff] }
 0x582   : > { %v1396_v49 = vsub.f32 1.5, %v1395_v48  ;;  %v4246_v48 = vld [vmem:[%s4695_s0 + $0x78] sm:$0xff]  ;;  %v4280_v40 = vld [vmem:[%s4695_s0 + $0x188] sm:$0xff]  ;;  %v4273_v11 = vld [vmem:[%s4695_s0 + $0x150] sm:$0xff] }
 0x583   : > { %v4898_v62 = vadd.f32 %v4426_v54, %v1407_v55  ;;  %v4252_v55 = vld [vmem:[%s4695_s0 + $0xa8] sm:$0xff] }
 0x584   : > { %v1397_v52 = vmul.f32 %v4467_v43, %v1396_v49  ;;  %v4262_v49 = vld [vmem:[%s4695_s0 + $0xf8] sm:$0xff] }
 0x586   : > { %v1401_v53 = vsel %vm1400_vm12, %v4467_v43, %v1397_v52  ;;  %v3576_v43 = vor.u32 %v4205_v37, %v3573_v38  ;;  %v4245_v52 = vld [vmem:[%s4695_s0 + $0x70] sm:$0xff]  ;;  %v4274_v38 = vld [vmem:[%s4695_s0 + $0x158] sm:$0xff] }
 0x587   : > { %v1403_v56 = vmul.f32 %v1401_v53, %v4837_v42  ;;  %v3629_v42 = vld [vmem:[%s4680_s1 + $0xe8] sm:$0xf0]  ;;  %v4261_v53 = vld [vmem:[%s4695_s0 + $0xf0] sm:$0xff] }
 0x588   : > { %v3632_v12 = vor.u32 %v4220_v1, %v3629_v42  ;;  %v4242_v1 = vld [vmem:[%s4695_s0 + $0x58] sm:$0xff]  ;;  %v4281_v37 = vld [vmem:[%s4695_s0 + $0x190] sm:$0xff] }
 0x589   : > { %v1408_v57 = vmul.f32 %v4425_v50, %v1403_v56  ;;  %v4237_v50 = vld [vmem:[%s4695_s0 + $0x30] sm:$0xff]  ;;  %v4244_v56 = vld [vmem:[%s4695_s0 + $0x68] sm:$0xff]  ;;  %v4258_v42 = vld [vmem:[%s4695_s0 + $0xd8] sm:$0xff] }
 0x58b   : > { %v4900_v63 = vadd.f32 %v4426_v54, %v1408_v57  ;;  %v4236_v54 = vld [vmem:[%s4695_s0 + $0x28] sm:$0xff] }
 0x58c   : > { %v4260_v57 = vld [vmem:[%s4695_s0 + $0xe8] sm:$0xff] }
 0x58d   : > { %v4907_v2 = vpack.c.bf16 %v4900_v63, %v4898_v62 }
 0x58f   : > { %3649 = vmatmul.msk.bf16.vlgmr.msra.gmra.mxu0 %vm729_vm1, %v4907_v2  ;;  %3650 = vmatmul.msk.bf16.vlgmr.msrb.gmra.mxu3 %vm729_vm1, %v4907_v2 }
 0x590   : > { %3651 = vmatmul.msk.bf16.vlgmr.msrb.gmra.mxu1 %vm729_vm1, %v4907_v2  ;;  %3652 = vmatmul.msk.bf16.vlgmr.msra.gmra.mxu2 %vm729_vm1, %v4907_v2 }
 0x591   : > { %1764 = vmatpush.bf16.msra.mxu0 %v3620_v3  ;;  %1778 = vmatpush.bf16.msrb.mxu3 %v3624_v6  ;;  %v4233_v3 = vld [vmem:[%s4695_s0 + $0x10] sm:$0xff] }
 0x592   : > { %1792 = vmatpush.bf16.msrb.mxu1 %v3628_v10  ;;  %1806 = vmatpush.bf16.msra.mxu2 %v3632_v12  ;;  %v4249_v6 = vld [vmem:[%s4695_s0 + $0x90] sm:$0xff]  ;;  %v4232_v10 = vld [vmem:[%s4695_s0 + $0x8] sm:$0xff] }
 0x593   : > { %v4240_v12 = vld [vmem:[%s4695_s0 + $0x48] sm:$0xff] }
 0x595   : > { %1765 = vmatpush.bf16.msra.mxu0 %v3556_v19  ;;  %1779 = vmatpush.bf16.msrb.mxu3 %v3560_v20  ;;  %v4255_v19 = vld [vmem:[%s4695_s0 + $0xc0] sm:$0xff]  ;;  %v4278_v20 = vld [vmem:[%s4695_s0 + $0x178] sm:$0xff] }
 0x596   : > { %1793 = vmatpush.bf16.msrb.mxu1 %v3564_v21  ;;  %1807 = vmatpush.bf16.msra.mxu2 %v3568_v22  ;;  %v4294_v21 = vld [vmem:[%s4695_s0 + $0x1f8] sm:$0xff]  ;;  %v4269_v22 = vld [vmem:[%s4695_s0 + $0x130] sm:$0xff] }
 0x59f   : > { %3653 = vmatmul.msk.bf16.vlgmr.msrb.gmra.mxu0 %vm729_vm1, %v4907_v2  ;;  %3654 = vmatmul.msk.bf16.vlgmr.msra.gmra.mxu3 %vm729_vm1, %v4907_v2 }
 0x5a0   : > { %3655 = vmatmul.msk.bf16.vlgmr.msra.gmra.mxu1 %vm729_vm1, %v4907_v2  ;;  %3656 = vmatmul.msk.bf16.vlgmr.msrb.gmra.mxu2 %vm729_vm1, %v4907_v2 }
 0x5a1   : > { %1820 = vmatpush.bf16.msrb.mxu0 %v3636_v31  ;;  %1834 = vmatpush.bf16.msra.mxu3 %v3640_v32  ;;  %v4292_v31 = vld [vmem:[%s4695_s0 + $0x1e8] sm:$0xff]  ;;  %v4266_v32 = vld [vmem:[%s4695_s0 + $0x118] sm:$0xff] }
 0x5a2   : > { %1848 = vmatpush.bf16.msra.mxu1 %v3644_v35  ;;  %1862 = vmatpush.bf16.msrb.mxu2 %v3648_v36  ;;  %v4291_v35 = vld [vmem:[%s4695_s0 + $0x1e0] sm:$0xff]  ;;  %v4265_v36 = vld [vmem:[%s4695_s0 + $0x110] sm:$0xff] }
 0x5a5   : > { %1821 = vmatpush.bf16.msrb.mxu0 %v3572_v41  ;;  %1835 = vmatpush.bf16.msra.mxu3 %v3576_v43  ;;  %v4289_v41 = vld [vmem:[%s4695_s0 + $0x1d0] sm:$0xff]  ;;  %v4263_v43 = vld [vmem:[%s4695_s0 + $0x100] sm:$0xff] }
 0x5a6   : > { %1849 = vmatpush.bf16.msra.mxu1 %v3580_v44  ;;  %1863 = vmatpush.bf16.msrb.mxu2 %v3584_v45  ;;  %v4279_v44 = vld [vmem:[%s4695_s0 + $0x180] sm:$0xff]  ;;  %v4272_v45 = vld [vmem:[%s4695_s0 + $0x148] sm:$0xff] }
 0x5af   : > { %3657 = vmatmul.msk.bf16.vlgmr.msra.gmra.mxu0 %vm729_vm1, %v4907_v2  ;;  %3658 = vmatmul.msk.bf16.vlgmr.msrb.gmra.mxu3 %vm729_vm1, %v4907_v2 }
 0x5b0   : > { %3659 = vmatmul.msk.bf16.vlgmr.msrb.gmra.mxu1 %vm729_vm1, %v4907_v2  ;;  %3660 = vmatmul.msk.bf16.vlgmr.msra.gmra.mxu2 %vm729_vm1, %v4907_v2 }
 0x5b1   : > { %2946 = vmatpush.bf16.msra.mxu0 %v4238_v46  ;;  %2974 = vmatpush.bf16.msrb.mxu1 %v4254_v47  ;;  %v4288_v46 = vld [vmem:[%s4695_s0 + $0x1c8] sm:$0xff]  ;;  %v4271_v47 = vld [vmem:[%s4695_s0 + $0x140] sm:$0xff] }
 0x5b2   : > { %2960 = vmatpush.bf16.msrb.mxu3 %v4246_v48  ;;  %2988 = vmatpush.bf16.msra.mxu2 %v4262_v49  ;;  %v4287_v48 = vld [vmem:[%s4695_s0 + $0x1c0] sm:$0xff] }
 0x5b3   : > { %v5030_v49 = vld [vmem:[%s4685_s3] sm:$0xff] }
 0x5b5   : > { %2947 = vmatpush.bf16.msra.mxu0 %v4237_v50  ;;  %2975 = vmatpush.bf16.msrb.mxu1 %v4253_v51 }
 0x5b6   : > { %2961 = vmatpush.bf16.msrb.mxu3 %v4245_v52  ;;  %2989 = vmatpush.bf16.msra.mxu2 %v4261_v53  ;;  %v1451_v52 = vperm.slane %v5030_v49, 0  ;;  %v1453_v53 = vperm.slane %v5030_v49, 2 }
 0x5b9   : > { %2948 = vmatpush.bf16.msra.mxu0 %v4236_v54  ;;  %2976 = vmatpush.bf16.msrb.mxu1 %v4252_v55 }
 0x5ba   : > { %2962 = vmatpush.bf16.msrb.mxu3 %v4244_v56  ;;  %2990 = vmatpush.bf16.msra.mxu2 %v4260_v57 }
 0x5bd   : > { %2949 = vmatpush.bf16.msra.mxu0 %v4235_v58  ;;  %2977 = vmatpush.bf16.msrb.mxu1 %v4251_v39  ;;  %v1452_v39 = vperm.slane %v5030_v49, 1 }
 0x5be   : > { %2963 = vmatpush.bf16.msrb.mxu3 %v4243_v59  ;;  %2991 = vmatpush.bf16.msra.mxu2 %v4259_v60 }
 0x5bf   : > { %3661 = vmatmul.msk.bf16.vlgmr.msrb.gmra.mxu0 %vm729_vm1, %v4907_v2  ;;  %3662 = vmatmul.msk.bf16.vlgmr.msra.gmra.mxu3 %vm729_vm1, %v4907_v2 }
 0x5c0   : > { %3663 = vmatmul.msk.bf16.vlgmr.msra.gmra.mxu1 %vm729_vm1, %v4907_v2  ;;  %3664 = vmatmul.msk.bf16.vlgmr.msrb.gmra.mxu2 %vm729_vm1, %v4907_v2  ;;  %v4248_v2 = vld [vmem:[%s4695_s0 + $0x88] sm:$0xff] }
 0x5c1   : > { %2950 = vmatpush.bf16.msra.mxu0 %v4234_v61  ;;  %2978 = vmatpush.bf16.msrb.mxu1 %v4250_v0  ;;  %v1454_v61 = vperm.slane %v5030_v49, 3 }
 0x5c2   : > { %2964 = vmatpush.bf16.msrb.mxu3 %v4242_v1  ;;  %2992 = vmatpush.bf16.msra.mxu2 %v4258_v42 }
 0x5c5   : > { %2951 = vmatpush.bf16.msra.mxu0 %v4233_v3  ;;  %2979 = vmatpush.bf16.msrb.mxu1 %v4249_v6 }
 0x5c6   : > { %2965 = vmatpush.bf16.msrb.mxu3 %v4241_v7  ;;  %2993 = vmatpush.bf16.msra.mxu2 %v4257_v8  ;;  %v4302_v7 = vld [vmem:[%s4695_s0 + $0x238] sm:$0xff] }
 0x5c9   : > { %2952 = vmatpush.bf16.msra.mxu0 %v4232_v10  ;;  %2980 = vmatpush.bf16.msrb.mxu1 %v4248_v2  ;;  %v4318_v2 = vld [vmem:[%s4695_s0 + $0x2b8] sm:$0xff] }
 0x5ca   : > { %2966 = vmatpush.bf16.msrb.mxu3 %v4240_v12  ;;  %2994 = vmatpush.bf16.msra.mxu2 %v4256_v13 }
 0x5cd   : > { %2953 = vmatpush.bf16.msra.mxu0 %v4231_v14  ;;  %2981 = vmatpush.bf16.msrb.mxu1 %v4247_v15 }
 0x5ce   : > { %2967 = vmatpush.bf16.msrb.mxu3 %v4239_v18  ;;  %2995 = vmatpush.bf16.msra.mxu2 %v4255_v19  ;;  %v4301_v19 = vld [vmem:[%s4695_s0 + $0x230] sm:$0xff] }
 0x5d1   : > { %3002 = vmatpush.bf16.msrb.mxu0 %v4270_v16  ;;  %3030 = vmatpush.bf16.msra.mxu1 %v4286_v17 }
 0x5d2   : > { %3016 = vmatpush.bf16.msra.mxu3 %v4278_v20  ;;  %3044 = vmatpush.bf16.msrb.mxu2 %v4294_v21 }
 0x5d5   : > { %3003 = vmatpush.bf16.msrb.mxu0 %v4269_v22  ;;  %3031 = vmatpush.bf16.msra.mxu1 %v4285_v23  ;;  %v4317_v23 = vld [vmem:[%s4695_s0 + $0x2b0] sm:$0xff] }
 0x5d6   : > { %3017 = vmatpush.bf16.msra.mxu3 %v4277_v24  ;;  %3045 = vmatpush.bf16.msrb.mxu2 %v4293_v25 }
 0x5d9   : > { %3004 = vmatpush.bf16.msrb.mxu0 %v4268_v26  ;;  %3032 = vmatpush.bf16.msra.mxu1 %v4284_v27  ;;  %v4310_v26 = vld [vmem:[%s4695_s0 + $0x278] sm:$0xff] }
 0x5da   : > { %3018 = vmatpush.bf16.msra.mxu3 %v4276_v30  ;;  %3046 = vmatpush.bf16.msrb.mxu2 %v4292_v31  ;;  %v1457_v31 = vperm.slane %v5030_v49, 6 }
 0x5dd   : > { %3005 = vmatpush.bf16.msrb.mxu0 %v4267_v28  ;;  %3033 = vmatpush.bf16.msra.mxu1 %v4283_v29  ;;  %v1455_v28 = vperm.slane %v5030_v49, 4  ;;  %v4326_v29 = vld [vmem:[%s4695_s0 + $0x2f8] sm:$0xff] }
 0x5de   : > { %3019 = vmatpush.bf16.msra.mxu3 %v4275_v34  ;;  %3047 = vmatpush.bf16.msrb.mxu2 %v4291_v35  ;;  %v4309_v35 = vld [vmem:[%s4695_s0 + $0x270] sm:$0xff] }
 0x5e1   : > { %3006 = vmatpush.bf16.msrb.mxu0 %v4266_v32  ;;  %3034 = vmatpush.bf16.msra.mxu1 %v4282_v33  ;;  %v4300_v32 = vld [vmem:[%s4695_s0 + $0x228] sm:$0xff] }
 0x5e2   : > { %3020 = vmatpush.bf16.msra.mxu3 %v4274_v38  ;;  %3048 = vmatpush.bf16.msrb.mxu2 %v4290_v5  ;;  %v4316_v33 = vld [vmem:[%s4695_s0 + $0x2a8] sm:$0xff]  ;;  %v4325_v38 = vld [vmem:[%s4695_s0 + $0x2f0] sm:$0xff] }
 0x5e5   : > { %3007 = vmatpush.bf16.msrb.mxu0 %v4265_v36  ;;  %3035 = vmatpush.bf16.msra.mxu1 %v4281_v37 }
 0x5e6   : > { %3021 = vmatpush.bf16.msra.mxu3 %v4273_v11  ;;  %3049 = vmatpush.bf16.msrb.mxu2 %v4289_v41  ;;  %v1456_v11 = vperm.slane %v5030_v49, 5 }
 0x5e9   : > { %3008 = vmatpush.bf16.msrb.mxu0 %v4264_v9  ;;  %3036 = vmatpush.bf16.msra.mxu1 %v4280_v40  ;;  %v4299_v40 = vld [vmem:[%s4695_s0 + $0x220] sm:$0xff] }
 0x5ea   : > { %3022 = vmatpush.bf16.msra.mxu3 %v4272_v45  ;;  %3050 = vmatpush.bf16.msrb.mxu2 %v4288_v46  ;;  %v1458_v45 = vperm.slane %v5030_v49, 7 }
 0x5ed   : > { %3009 = vmatpush.bf16.msrb.mxu0 %v4263_v43  ;;  %3037 = vmatpush.bf16.msra.mxu1 %v4279_v44  ;;  %v4315_v44 = vld [vmem:[%s4695_s0 + $0x2a0] sm:$0xff] }
 0x5ee   : > { %3023 = vmatpush.bf16.msra.mxu3 %v4271_v47  ;;  %3051 = vmatpush.bf16.msrb.mxu2 %v4287_v48  ;;  %v4308_v47 = vld [vmem:[%s4695_s0 + $0x268] sm:$0xff] }
 0x60c   : > { %v1655_v50 = vpop.f32.mrf.mxu0 }
 0x60d   : > { %v1683_v51 = vpop.f32.mrf.mxu1  ;;  %v1656_v55 = vadd.f32 %v1655_v50, %v1451_v52 }
 0x60e   : > { %v1684_v57 = vadd.f32 %v1683_v51, %v1453_v53  ;;  %v4324_v51 = vld [vmem:[%s4695_s0 + $0x2e8] sm:$0xff] }
 0x60f   : > { %v1870_v1 = vmax.f32 %v1656_v55, 0.0 }
 0x610   : > { %v1872_v3 = vmax.f32 %v1684_v57, 0.0  ;;  %v4314_v57 = vld [vmem:[%s4695_s0 + $0x298] sm:$0xff] }
 0x612   : > { %v1669_v54 = vpop.f32.mrf.mxu3 }
 0x613   : > { %v1697_v56 = vpop.f32.mrf.mxu2  ;;  %v1670_v8 = vadd.f32 %v1669_v54, %v1452_v39  ;;  %v4298_v54 = vld [vmem:[%s4695_s0 + $0x218] sm:$0xff] }
 0x614   : > { %v1657_v58 = vpop.f32.mrf.mxu0  ;;  %v1698_v12 = vadd.f32 %v1697_v56, %v1454_v61 }
 0x615   : > { %v1658_v59 = vadd.f32 %v1657_v58, %v1451_v52  ;;  %v1685_v60 = vpop.f32.mrf.mxu1  ;;  %v1871_v20 = vmax.f32 %v1670_v8, 0.0 }
 0x616   : > { %v1686_v0 = vadd.f32 %v1685_v60, %v1453_v53  ;;  %v1873_v24 = vmax.f32 %v1698_v12, 0.0 }
 0x617   : > { %v1886_v42 = vmax.f32 %v1658_v59, 0.0  ;;  %v4307_v59 = vld [vmem:[%s4695_s0 + $0x260] sm:$0xff] }
 0x618   : > { %v1888_v6 = vmax.f32 %v1686_v0, 0.0  ;;  %v4323_v0 = vld [vmem:[%s4695_s0 + $0x2e0] sm:$0xff] }
 0x619   : > { %v1902_v10 = vpack.c.bf16 %v1886_v42, %v1870_v1  ;;  %v5059_v42 = vld [vmem:[%s4685_s3 + $0x8] sm:$0xff] }
 0x61a   : > { %v1904_v13 = vpack.c.bf16 %v1888_v6, %v1872_v3  ;;  %v1671_v14 = vpop.f32.mrf.mxu3  ;;  %v4297_v6 = vld [vmem:[%s4695_s0 + $0x210] sm:$0xff] }
 0x61b   : > { %v1672_v15 = vadd.f32 %v1671_v14, %v1452_v39  ;;  %v1699_v16 = vpop.f32.mrf.mxu2  ;;  %2954 = vmatmul.bf16.vlgmr.msra.gmra.mxu0 %v1902_v10  ;;  %v4306_v14 = vld [vmem:[%s4695_s0 + $0x258] sm:$0xff] }
 0x61c   : > { %v1700_v17 = vadd.f32 %v1699_v16, %v1454_v61  ;;  %2982 = vmatmul.bf16.vlgmr.msrb.gmra.mxu1 %v1904_v13  ;;  %3058 = vmatpush.bf16.msra.mxu0 %v4302_v7  ;;  %v1711_v18 = vpop.f32.mrf.mxu0  ;;  %v1459_v16 = vperm.slane %v5059_v42, 0 }
 0x61d   : > { %v1887_v21 = vmax.f32 %v1672_v15, 0.0  ;;  %3086 = vmatpush.bf16.msrb.mxu1 %v4318_v2  ;;  %v1739_v22 = vpop.f32.mrf.mxu1  ;;  %v1712_v36 = vadd.f32 %v1711_v18, %v1455_v28  ;;  %v4313_v2 = vld [vmem:[%s4695_s0 + $0x290] sm:$0xff] }
 0x61e   : > { %v1889_v25 = vmax.f32 %v1700_v17, 0.0  ;;  %v1740_v5 = vadd.f32 %v1739_v22, %v1457_v31  ;;  %v4322_v17 = vld [vmem:[%s4695_s0 + $0x2d8] sm:$0xff] }
 0x61f   : > { %v1903_v27 = vpack.c.bf16 %v1887_v21, %v1871_v20  ;;  %v1874_v48 = vmax.f32 %v1712_v36, 0.0  ;;  %v4296_v20 = vld [vmem:[%s4695_s0 + $0x208] sm:$0xff] }
 0x620   : > { %v1905_v30 = vpack.c.bf16 %v1889_v25, %v1873_v24  ;;  %3059 = vmatpush.bf16.msra.mxu0 %v4301_v19  ;;  %v1876_v52 = vmax.f32 %v1740_v5, 0.0  ;;  %v1461_v19 = vperm.slane %v5059_v42, 2  ;;  %v4312_v21 = vld [vmem:[%s4695_s0 + $0x288] sm:$0xff] }
 0x621   : > { %3087 = vmatpush.bf16.msrb.mxu1 %v4317_v23  ;;  %2968 = vmatmul.bf16.vlgmr.msrb.gmra.mxu3 %v1903_v27  ;;  %v4305_v23 = vld [vmem:[%s4695_s0 + $0x250] sm:$0xff] }
 0x622   : > { %2996 = vmatmul.bf16.vlgmr.msra.gmra.mxu2 %v1905_v30  ;;  %3072 = vmatpush.bf16.msrb.mxu3 %v4310_v26  ;;  %v1725_v34 = vpop.f32.mrf.mxu3  ;;  %v4321_v26 = vld [vmem:[%s4695_s0 + $0x2d0] sm:$0xff]  ;;  %v1460_v30 = vperm.slane %v5059_v42, 1 }
 0x623   : > { %3100 = vmatpush.bf16.msra.mxu2 %v4326_v29  ;;  %v1753_v37 = vpop.f32.mrf.mxu2  ;;  %v1726_v55 = vadd.f32 %v1725_v34, %v1456_v11  ;;  %v4295_v29 = vld [vmem:[%s4695_s0 + $0x200] sm:$0xff]  ;;  %v4334_v34 = vld [vmem:[%s4695_s0 + $0x338] sm:$0xff] }
 0x624   : > { %3060 = vmatpush.bf16.msra.mxu0 %v4300_v32  ;;  %v1713_v9 = vpop.f32.mrf.mxu0  ;;  %v1754_v49 = vadd.f32 %v1753_v37, %v1458_v45  ;;  %v4350_v37 = vld [vmem:[%s4695_s0 + $0x3b8] sm:$0xff] }
 0x625   : > { %3088 = vmatpush.bf16.msrb.mxu1 %v4316_v33  ;;  %v1714_v41 = vadd.f32 %v1713_v9, %v1455_v28  ;;  %v1741_v43 = vpop.f32.mrf.mxu1  ;;  %v1875_v7 = vmax.f32 %v1726_v55, 0.0  ;;  %v4311_v33 = vld [vmem:[%s4695_s0 + $0x280] sm:$0xff]  ;;  %v4342_v55 = vld [vmem:[%s4695_s0 + $0x378] sm:$0xff] }
 0x626   : > { %v1742_v46 = vadd.f32 %v1741_v43, %v1457_v31  ;;  %3073 = vmatpush.bf16.msrb.mxu3 %v4309_v35  ;;  %v1877_v12 = vmax.f32 %v1754_v49, 0.0  ;;  %v1462_v35 = vperm.slane %v5059_v42, 3 }
 0x627   : > { %v1890_v50 = vmax.f32 %v1714_v41, 0.0  ;;  %3101 = vmatpush.bf16.msra.mxu2 %v4325_v38  ;;  %v4304_v38 = vld [vmem:[%s4695_s0 + $0x248] sm:$0xff] }
 0x628   : > { %v1892_v53 = vmax.f32 %v1742_v46, 0.0  ;;  %3061 = vmatpush.bf16.msra.mxu0 %v4299_v40  ;;  %v4320_v40 = vld [vmem:[%s4695_s0 + $0x2c8] sm:$0xff] }
 0x629   : > { %v1906_v56 = vpack.c.bf16 %v1890_v50, %v1874_v48  ;;  %3089 = vmatpush.bf16.msrb.mxu1 %v4315_v44  ;;  %v4349_v50 = vld [vmem:[%s4695_s0 + $0x3b0] sm:$0xff] }
 0x62a   : > { %v1908_v58 = vpack.c.bf16 %v1892_v53, %v1876_v52  ;;  %3074 = vmatpush.bf16.msrb.mxu3 %v4308_v47  ;;  %v1727_v39 = vpop.f32.mrf.mxu3 }
 0x62b   : > { %3102 = vmatpush.bf16.msra.mxu2 %v4324_v51  ;;  %v1728_v60 = vadd.f32 %v1727_v39, %v1456_v11  ;;  %v1755_v61 = vpop.f32.mrf.mxu2  ;;  %3010 = vmatmul.bf16.vlgmr.msrb.gmra.mxu0 %v1906_v56  ;;  %v4303_v51 = vld [vmem:[%s4695_s0 + $0x240] sm:$0xff]  ;;  %v4332_v39 = vld [vmem:[%s4695_s0 + $0x328] sm:$0xff] }
 0x62c   : > { %v1756_v1 = vadd.f32 %v1755_v61, %v1458_v45  ;;  %3038 = vmatmul.bf16.vlgmr.msra.gmra.mxu1 %v1908_v58  ;;  %3062 = vmatpush.bf16.msra.mxu0 %v4298_v54  ;;  %v1767_v3 = vpop.f32.mrf.mxu0  ;;  %v4333_v45 = vld [vmem:[%s4695_s0 + $0x330] sm:$0xff]  ;;  %v4319_v54 = vld [vmem:[%s4695_s0 + $0x2c0] sm:$0xff]  ;;  %v4348_v61 = vld [vmem:[%s4695_s0 + $0x3a8] sm:$0xff] }
 0x62d   : > { %v1891_v8 = vmax.f32 %v1728_v60, 0.0  ;;  %3090 = vmatpush.bf16.msrb.mxu1 %v4314_v57  ;;  %v1795_v10 = vpop.f32.mrf.mxu1  ;;  %v1768_v24 = vadd.f32 %v1767_v3, %v1459_v16  ;;  %v4358_v57 = vld [vmem:[%s4695_s0 + $0x3f8] sm:$0xff] }
 0x62e   : > { %v1893_v13 = vmax.f32 %v1756_v1, 0.0  ;;  %3075 = vmatpush.bf16.msrb.mxu3 %v4307_v59  ;;  %v1796_v27 = vadd.f32 %v1795_v10, %v1461_v19  ;;  %v4341_v1 = vld [vmem:[%s4695_s0 + $0x370] sm:$0xff] }
 0x62f   : > { %v1907_v15 = vpack.c.bf16 %v1891_v8, %v1875_v7  ;;  %3103 = vmatpush.bf16.msra.mxu2 %v4323_v0  ;;  %v1878_v5 = vmax.f32 %v1768_v24, 0.0  ;;  %v4331_v8 = vld [vmem:[%s4695_s0 + $0x320] sm:$0xff]  ;;  %v1463_v24 = vperm.slane %v5059_v42, 4 }
 0x630   : > { %v1909_v18 = vpack.c.bf16 %v1893_v13, %v1877_v12  ;;  %3063 = vmatpush.bf16.msra.mxu0 %v4297_v6  ;;  %v1880_v11 = vmax.f32 %v1796_v27, 0.0  ;;  %v4357_v6 = vld [vmem:[%s4695_s0 + $0x3f0] sm:$0xff]  ;;  %v4340_v12 = vld [vmem:[%s4695_s0 + $0x368] sm:$0xff]  ;;  %v1465_v27 = vperm.slane %v5059_v42, 6 }
 0x631   : > { %3091 = vmatpush.bf16.msrb.mxu1 %v4313_v2  ;;  %3024 = vmatmul.bf16.vlgmr.msra.gmra.mxu3 %v1907_v15  ;;  %v4347_v2 = vld [vmem:[%s4695_s0 + $0x3a0] sm:$0xff]  ;;  %v4356_v13 = vld [vmem:[%s4695_s0 + $0x3e8] sm:$0xff]  ;;  %v4346_v15 = vld [vmem:[%s4695_s0 + $0x398] sm:$0xff] }
 0x632   : > { %3052 = vmatmul.bf16.vlgmr.msrb.gmra.mxu2 %v1909_v18  ;;  %3076 = vmatpush.bf16.msrb.mxu3 %v4306_v14  ;;  %v1781_v22 = vpop.f32.mrf.mxu3  ;;  %v4330_v14 = vld [vmem:[%s4695_s0 + $0x318] sm:$0xff] }
 0x633   : > { %3104 = vmatpush.bf16.msra.mxu2 %v4322_v17  ;;  %v1809_v25 = vpop.f32.mrf.mxu2  ;;  %v1782_v43 = vadd.f32 %v1781_v22, %v1460_v30  ;;  %v4339_v17 = vld [vmem:[%s4695_s0 + $0x360] sm:$0xff] }
 0x634   : > { %3064 = vmatpush.bf16.msra.mxu0 %v4296_v20  ;;  %v1769_v28 = vpop.f32.mrf.mxu0  ;;  %v1810_v46 = vadd.f32 %v1809_v25, %v1462_v35  ;;  %v4329_v20 = vld [vmem:[%s4695_s0 + $0x310] sm:$0xff] }
 0x635   : > { %3092 = vmatpush.bf16.msrb.mxu1 %v4312_v21  ;;  %v1770_v31 = vadd.f32 %v1769_v28, %v1459_v16  ;;  %v1797_v32 = vpop.f32.mrf.mxu1  ;;  %v1879_v49 = vmax.f32 %v1782_v43, 0.0  ;;  %v4345_v21 = vld [vmem:[%s4695_s0 + $0x390] sm:$0xff]  ;;  %v4328_v28 = vld [vmem:[%s4695_s0 + $0x308] sm:$0xff] }
 0x636   : > { %v1798_v36 = vadd.f32 %v1797_v32, %v1461_v19  ;;  %3077 = vmatpush.bf16.msrb.mxu3 %v4305_v23  ;;  %v1881_v59 = vmax.f32 %v1810_v46, 0.0  ;;  %v4355_v19 = vld [vmem:[%s4695_s0 + $0x3e0] sm:$0xff]  ;;  %v4338_v23 = vld [vmem:[%s4695_s0 + $0x358] sm:$0xff]  ;;  %v4337_v32 = vld [vmem:[%s4695_s0 + $0x350] sm:$0xff] }
 0x637   : > { %v1894_v9 = vmax.f32 %v1770_v31, 0.0  ;;  %3105 = vmatpush.bf16.msra.mxu2 %v4321_v26  ;;  %v4354_v26 = vld [vmem:[%s4695_s0 + $0x3d8] sm:$0xff]  ;;  %v4336_v43 = vld [vmem:[%s4695_s0 + $0x348] sm:$0xff] }
 0x638   : > { %v1896_v41 = vmax.f32 %v1798_v36, 0.0  ;;  %3065 = vmatpush.bf16.msra.mxu0 %v4295_v29  ;;  %v4352_v46 = vld [vmem:[%s4695_s0 + $0x3c8] sm:$0xff] }
 0x639   : > { %v1910_v44 = vpack.c.bf16 %v1894_v9, %v1878_v5  ;;  %3093 = vmatpush.bf16.msrb.mxu1 %v4311_v33 }
 0x63a   : > { %v1912_v47 = vpack.c.bf16 %v1896_v41, %v1880_v11  ;;  %3078 = vmatpush.bf16.msrb.mxu3 %v4304_v38  ;;  %v1783_v48 = vpop.f32.mrf.mxu3  ;;  %v1464_v38 = vperm.slane %v5059_v42, 5  ;;  %v1466_v11 = vperm.slane %v5059_v42, 7 }
 0x63b   : > { %3106 = vmatpush.bf16.msra.mxu2 %v4320_v40  ;;  %v1784_v52 = vadd.f32 %v1783_v48, %v1460_v30  ;;  %v1811_v53 = vpop.f32.mrf.mxu2  ;;  %3066 = vmatmul.bf16.vlgmr.msra.gmra.mxu0 %v1910_v44  ;;  %v4344_v30 = vld [vmem:[%s4695_s0 + $0x388] sm:$0xff]  ;;  %v4343_v40 = vld [vmem:[%s4695_s0 + $0x380] sm:$0xff] }
 0x63c   : > { %3114 = vmatpush.bf16.msrb.mxu0 %v4334_v34  ;;  %v1812_v56 = vadd.f32 %v1811_v53, %v1462_v35  ;;  %3094 = vmatmul.bf16.vlgmr.msrb.gmra.mxu1 %v1912_v47  ;;  %v1823_v7 = vpop.f32.mrf.mxu0  ;;  %v4353_v34 = vld [vmem:[%s4695_s0 + $0x3d0] sm:$0xff] }
 0x63d   : > { %3142 = vmatpush.bf16.msra.mxu1 %v4350_v37  ;;  %v1895_v58 = vmax.f32 %v1784_v52, 0.0  ;;  %v1851_v10 = vpop.f32.mrf.mxu1  ;;  %v1824_v33 = vadd.f32 %v1823_v7, %v1463_v24  ;;  %v4327_v37 = vld [vmem:[%s4695_s0 + $0x300] sm:$0xff] }
 0x63e   : > { %v1897_v60 = vmax.f32 %v1812_v56, 0.0  ;;  %3079 = vmatpush.bf16.msrb.mxu3 %v4303_v51  ;;  %v1852_v35 = vadd.f32 %v1851_v10, %v1465_v27 }
 0x63f   : > { %v1911_v0 = vpack.c.bf16 %v1895_v58, %v1879_v49  ;;  %3107 = vmatpush.bf16.msra.mxu2 %v4319_v54  ;;  %v1882_v44 = vmax.f32 %v1824_v33, 0.0  ;;  %v4335_v54 = vld [vmem:[%s4695_s0 + $0x340] sm:$0xff] }
 0x640   : > { %3115 = vmatpush.bf16.msrb.mxu0 %v4333_v45  ;;  %v1913_v3 = vpack.c.bf16 %v1897_v60, %v1881_v59  ;;  %v1884_v47 = vmax.f32 %v1852_v35, 0.0 }
 0x641   : > { %3143 = vmatpush.bf16.msra.mxu1 %v4349_v50  ;;  %3080 = vmatmul.bf16.vlgmr.msrb.gmra.mxu3 %v1911_v0 }
 0x642   : > { %3128 = vmatpush.bf16.msra.mxu3 %v4342_v55  ;;  %3108 = vmatmul.bf16.vlgmr.msra.gmra.mxu2 %v1913_v3  ;;  %v1837_v16 = vpop.f32.mrf.mxu3  ;;  %v4351_v55 = vld [vmem:[%s4695_s0 + $0x3c0] sm:$0xff] }
 0x643   : > { %3156 = vmatpush.bf16.msrb.mxu2 %v4358_v57  ;;  %v1865_v18 = vpop.f32.mrf.mxu2  ;;  %v1838_v50 = vadd.f32 %v1837_v16, %v1464_v38 }
 0x644   : > { %3116 = vmatpush.bf16.msrb.mxu0 %v4332_v39  ;;  %v1825_v22 = vpop.f32.mrf.mxu0  ;;  %v1866_v52 = vadd.f32 %v1865_v18, %v1466_v11 }
 0x645   : > { %3144 = vmatpush.bf16.msra.mxu1 %v4348_v61  ;;  %v1853_v25 = vpop.f32.mrf.mxu1  ;;  %v1826_v29 = vadd.f32 %v1825_v22, %v1463_v24  ;;  %v1883_v57 = vmax.f32 %v1838_v50, 0.0 }
 0x646   : > { %3129 = vmatpush.bf16.msra.mxu3 %v4341_v1  ;;  %v1854_v31 = vadd.f32 %v1853_v25, %v1465_v27  ;;  %v1885_v49 = vmax.f32 %v1866_v52, 0.0 }
 0x647   : > { %3157 = vmatpush.bf16.msrb.mxu2 %v4357_v6  ;;  %v1898_v5 = vmax.f32 %v1826_v29, 0.0 }
 0x648   : > { %3117 = vmatpush.bf16.msrb.mxu0 %v4331_v8  ;;  %v1900_v41 = vmax.f32 %v1854_v31, 0.0  ;;  %v4427_v8 = vld [vmem:[%s688_s14] ss:$0 sm:$0xff] }
 0x649   : > { %3145 = vmatpush.bf16.msra.mxu1 %v4347_v2  ;;  %v1914_v51 = vpack.c.bf16 %v1898_v5, %v1882_v44 }
 0x64a   : > { %3130 = vmatpush.bf16.msra.mxu3 %v4340_v12  ;;  %v1839_v36 = vpop.f32.mrf.mxu3  ;;  %v1916_v53 = vpack.c.bf16 %v1900_v41, %v1884_v47 }
 0x64b   : > { %3158 = vmatpush.bf16.msrb.mxu2 %v4356_v13  ;;  %v1867_v9 = vpop.f32.mrf.mxu2  ;;  %v1840_v45 = vadd.f32 %v1839_v36, %v1464_v38 }
 0x64c   : > { %3118 = vmatpush.bf16.msrb.mxu0 %v4330_v14  ;;  %v1868_v48 = vadd.f32 %v1867_v9, %v1466_v11 }
 0x64d   : > { %3146 = vmatpush.bf16.msra.mxu1 %v4346_v15  ;;  %v1899_v42 = vmax.f32 %v1840_v45, 0.0 }
 0x64e   : > { %3131 = vmatpush.bf16.msra.mxu3 %v4339_v17  ;;  %v1901_v56 = vmax.f32 %v1868_v48, 0.0 }
 0x64f   : > { %3159 = vmatpush.bf16.msrb.mxu2 %v4355_v19  ;;  %v1915_v58 = vpack.c.bf16 %v1899_v42, %v1883_v57 }
 0x650   : > { %3119 = vmatpush.bf16.msrb.mxu0 %v4329_v20  ;;  %v1917_v39 = vpack.c.bf16 %v1901_v56, %v1885_v49 }
 0x651   : > { %3147 = vmatpush.bf16.msra.mxu1 %v4345_v21 }
 0x652   : > { %3132 = vmatpush.bf16.msra.mxu3 %v4338_v23 }
 0x653   : > { %3160 = vmatpush.bf16.msrb.mxu2 %v4354_v26 }
 0x654   : > { %3120 = vmatpush.bf16.msrb.mxu0 %v4328_v28 }
 0x655   : > { %3148 = vmatpush.bf16.msra.mxu1 %v4344_v30 }
 0x656   : > { %3133 = vmatpush.bf16.msra.mxu3 %v4337_v32 }
 0x657   : > { %3161 = vmatpush.bf16.msrb.mxu2 %v4353_v34 }
 0x658   : > { %3121 = vmatpush.bf16.msrb.mxu0 %v4327_v37 }
 0x659   : > { %3149 = vmatpush.bf16.msra.mxu1 %v4343_v40 }
 0x65a   : > { %3134 = vmatpush.bf16.msra.mxu3 %v4336_v43 }
 0x65b   : > { %3162 = vmatpush.bf16.msrb.mxu2 %v4352_v46  ;;  %3122 = vmatmul.bf16.vlgmr.msrb.gmra.mxu0 %v1914_v51 }
 0x65c   : > { %3150 = vmatmul.bf16.vlgmr.msra.gmra.mxu1 %v1916_v53 }
 0x65e   : > { %3135 = vmatpush.bf16.msra.mxu3 %v4335_v54 }
 0x65f   : > { %3163 = vmatpush.bf16.msrb.mxu2 %v4351_v55 }
 0x661   : > { %3136 = vmatmul.bf16.vlgmr.msra.gmra.mxu3 %v1915_v58 }
 0x662   : > { %3164 = vmatmul.bf16.vlgmr.msrb.gmra.mxu2 %v1917_v39 }
 0x698   : > { %v2955_v59 = vpop.f32.mrf.mxu0 }
 0x699   : > { %v2983_v60 = vpop.f32.mrf.mxu1  ;;  %v2956_v2 = vadd.f32 %v4427_v8, %v2955_v59 }
 0x6a0   : > { %v2957_v1 = vpop.f32.mrf.mxu0 }
 0x6a1   : > { %v2985_v3 = vpop.f32.mrf.mxu1  ;;  %v2958_v18 = vadd.f32 %v4427_v8, %v2957_v1 }
 0x6a4   : > { %v2969_v61 = vpop.f32.mrf.mxu3 }
 0x6a5   : > { %v2997_v0 = vpop.f32.mrf.mxu2  ;;  %v2970_v12 = vadd.f32 %v2969_v61, %v2956_v2 }
 0x6a7   : > { %v2984_v16 = vadd.f32 %v2983_v60, %v2970_v12 }
 0x6a8   : > { %v3011_v10 = vpop.f32.mrf.mxu0 }
 0x6a9   : > { %v3039_v13 = vpop.f32.mrf.mxu1  ;;  %v2998_v19 = vadd.f32 %v2997_v0, %v2984_v16 }
 0x6ab   : > { %v3012_v23 = vadd.f32 %v3011_v10, %v2998_v19 }
 0x6ac   : > { %v2971_v6 = vpop.f32.mrf.mxu3 }
 0x6ad   : > { %v2999_v7 = vpop.f32.mrf.mxu2  ;;  %v2972_v20 = vadd.f32 %v2971_v6, %v2958_v18 }
 0x6af   : > { %v2986_v24 = vadd.f32 %v2985_v3, %v2972_v20 }
 0x6b0   : > { %v3013_v17 = vpop.f32.mrf.mxu0 }
 0x6b1   : > { %v3041_v21 = vpop.f32.mrf.mxu1  ;;  %v3000_v28 = vadd.f32 %v2999_v7, %v2986_v24 }
 0x6b3   : > { %v3014_v30 = vadd.f32 %v3013_v17, %v3000_v28 }
 0x6b4   : > { %v3025_v14 = vpop.f32.mrf.mxu3 }
 0x6b5   : > { %v3053_v15 = vpop.f32.mrf.mxu2  ;;  %v3026_v26 = vadd.f32 %v3025_v14, %v3012_v23 }
 0x6b7   : > { %v3040_v29 = vadd.f32 %v3039_v13, %v3026_v26 }
 0x6b8   : > { %v3067_v27 = vpop.f32.mrf.mxu0 }
 0x6b9   : > { %v3095_v31 = vpop.f32.mrf.mxu1  ;;  %v3054_v33 = vadd.f32 %v3053_v15, %v3040_v29 }
 0x6bb   : > { %v3068_v37 = vadd.f32 %v3067_v27, %v3054_v33  ;;  %v4429_v33 = vld [vmem:[%s694_s16] ss:$0 sm:$0xff]  ;;  %s5204_s16 = sld [smem:[#allocation13_spill]] (!%p4177_p6) }
 0x6bc   : > { %v3027_v22 = vpop.f32.mrf.mxu3 }
 0x6bd   : > { %v3055_v25 = vpop.f32.mrf.mxu2  ;;  %v3028_v34 = vadd.f32 %v3027_v22, %v3014_v30 }
 0x6bf   : > { %v3042_v38 = vadd.f32 %v3041_v21, %v3028_v34 }
 0x6c0   : > { %v3069_v36 = vpop.f32.mrf.mxu0 }
 0x6c1   : > { %v3056_v9 = vadd.f32 %v3055_v25, %v3042_v38  ;;  %v3097_v40 = vpop.f32.mrf.mxu1 }
 0x6c3   : > { %v3070_v45 = vadd.f32 %v3069_v36, %v3056_v9 }
 0x6c4   : > { %v3081_v32 = vpop.f32.mrf.mxu3 }
 0x6c5   : > { %v3109_v35 = vpop.f32.mrf.mxu2  ;;  %v3082_v5 = vadd.f32 %v3081_v32, %v3068_v37 }
 0x6c7   : > { %v3096_v41 = vadd.f32 %v3095_v31, %v3082_v5  ;;  %v4428_v31 = vld [vmem:[%s691_s27] ss:$0 sm:$0xff] }
 0x6c9   : > { %v3110_v46 = vadd.f32 %v3109_v35, %v3096_v41 }
 0x6cc   : > { %v3083_v11 = vpop.f32.mrf.mxu3 }
 0x6cd   : > { %v3111_v43 = vpop.f32.mrf.mxu2  ;;  %v3084_v47 = vadd.f32 %v3083_v11, %v3070_v45 }
 0x6cf   : > { %v3098_v52 = vadd.f32 %v3097_v40, %v3084_v47 }
 0x6d1   : > { %v3112_v56 = vadd.f32 %v3111_v43, %v3098_v52 }
 0x6d8   : > { %v3123_v44 = vpop.f32.mrf.mxu0 }
 0x6d9   : > { %v3124_v48 = vadd.f32 %v3123_v44, %v3110_v46  ;;  %v3151_v50 = vpop.f32.mrf.mxu1 }
 0x6e0   : > { %v3125_v55 = vpop.f32.mrf.mxu0 }
 0x6e1   : > { %v3126_v49 = vadd.f32 %v3125_v55, %v3112_v56  ;;  %v3153_v61 = vpop.f32.mrf.mxu1 }
 0x6e4   : > { %v3137_v51 = vpop.f32.mrf.mxu3 }
 0x6e5   : > { %v3138_v53 = vadd.f32 %v3137_v51, %v3124_v48  ;;  %v3165_v54 = vpop.f32.mrf.mxu2 }
 0x6e7   : > { %v3152_v42 = vadd.f32 %v3151_v50, %v3138_v53 }
 0x6e9   : > { %v3166_v57 = vadd.f32 %v3165_v54, %v3152_v42 }
 0x6eb   : > { %v3170_v58 = vadd.f32 %v3166_v57, %v4898_v62 }
 0x6ec   : > { %v3139_v39 = vpop.f32.mrf.mxu3 }
 0x6ed   : > { %v3140_v59 = vadd.f32 %v3139_v39, %v3126_v49  ;;  %v3174_v60 = vsel %vm729_vm1, %v3170_v58, 0.0  ;;  %v3167_v1 = vpop.f32.mrf.mxu2 }
 0x6ee   : > { %3175 = vadd.xlane.f32.xlu0 %v3174_v60 }
 0x6ef   : > { %v3154_v0 = vadd.f32 %v3153_v61, %v3140_v59 }
 0x6f1   : > { %v3168_v3 = vadd.f32 %v3167_v1, %v3154_v0 }
 0x6f3   : > { %v3171_v6 = vadd.f32 %v3168_v3, %v4900_v63 }
 0x6f5   : > { %v3177_v7 = vsel %vm729_vm1, %v3171_v6, 0.0 }
 0x6f6   : > { %3178 = vadd.xlane.f32.xlu2 %v3177_v7 }
 0x761   : > { %v3176_v8 = vpop.xlane.xlu0 %3175 }
 0x762   : > { %v3180_v10 = vmul.f32 %v3176_v8, %v4828_v4 }
 0x764   : > { %v3182_v2 = vsub.f32 %v3170_v58, %v3180_v10 }
 0x766   : > { %v3184_v12 = vmul.f32 %v3182_v2, %v3182_v2 }
 0x768   : > { %v3186_v62 = vsel %vm729_vm1, %v3184_v12, 0.0 }
 0x769   : > { %v3179_v13 = vpop.xlane.xlu2 %3178  ;;  %3187 = vadd.xlane.f32.xlu0 %v3186_v62 }
 0x76a   : > { %v3181_v14 = vmul.f32 %v3179_v13, %v4828_v4 }
 0x76c   : > { %v3183_v15 = vsub.f32 %v3171_v6, %v3181_v14 }
 0x76e   : > { %v3185_v16 = vmul.f32 %v3183_v15, %v3183_v15 }
 0x770   : > { %v3189_v17 = vsel %vm729_vm1, %v3185_v16, 0.0 }
 0x771   : > { %3190 = vadd.xlane.f32.xlu1 %v3189_v17 }
 0x7dc   : > { %v3188_v63 = vpop.xlane.xlu0 %3187 }
 0x7dd   : > { %v3192_v18 = vmul.f32 %v3188_v63, %v4828_v4 }
 0x7df   : > { %v3194_v19 = vadd.f32 1e-05, %v3192_v18 }
 0x7e1   : > { %4468 = vrsqrt.f32 %v3194_v19  ;;  %vm3202_vm14 = vweird.f32 %v3194_v19 }
 0x7e4   : > { %v3191_v20 = vpop.xlane.xlu1 %3190 }
 0x7e5   : > { %v3193_v21 = vmul.f32 %v3191_v20, %v4828_v4 }
 0x7e7   : > { %v4469_v22 = vpop.eup %4468  ;;  %v3195_v23 = vadd.f32 1e-05, %v3193_v21 }
 0x7e8   : > { %v3197_v24 = vmul.f32 %v4469_v22, %v3194_v19  ;;  %vm3203_vm13 = vweird.f32 %v4469_v22 }
 0x7e9   : > { %4470 = vrsqrt.f32 %v3195_v23  ;;  %vm3204_vm15 = vmor %vm3202_vm14, %vm3203_vm13  ;;  %vm3212_vm2 = vweird.f32 %v3195_v23 }
 0x7ea   : > { %v3198_v25 = vmul.f32 %v4469_v22, %v3197_v24 }
 0x7ec   : > { %v3199_v26 = vmul.f32 0.5, %v3198_v25 }
 0x7ee   : > { %v3200_v27 = vsub.f32 1.5, %v3199_v26 }
 0x7ef   : > { %v4471_v28 = vpop.eup %4470 }
 0x7f0   : > { %v3201_v29 = vmul.f32 %v4469_v22, %v3200_v27  ;;  %v3207_v30 = vmul.f32 %v4471_v28, %v3195_v23  ;;  %vm3213_vm0 = vweird.f32 %v4471_v28 }
 0x7f1   : > { %vm3214_vm3 = vmor %vm3212_vm2, %vm3213_vm0 }
 0x7f2   : > { %v3205_v4 = vsel %vm3204_vm15, %v4469_v22, %v3201_v29  ;;  %v3208_v32 = vmul.f32 %v4471_v28, %v3207_v30 }
 0x7f3   : > { %v3216_v34 = vmul.f32 %v3205_v4, %v3182_v2 }
 0x7f4   : > { %v3209_v35 = vmul.f32 0.5, %v3208_v32 }
 0x7f5   : > { %v3221_v36 = vmul.f32 %v4428_v31, %v3216_v34 }
 0x7f6   : > { %v3210_v37 = vsub.f32 1.5, %v3209_v35 }
 0x7f7   : > { %v3226_v38 = vadd.f32 %v4429_v33, %v3221_v36 }
 0x7f8   : > { %v3211_v5 = vmul.f32 %v4471_v28, %v3210_v37 }
 0x7f9   : > { %3228 = vst.msk [vmem:[#allocation2] sm:$0xff] %vm729_vm1, %v3226_v38 }
 0x7fa   : > { %v3215_v9 = vsel %vm3214_vm3, %v4471_v28, %v3211_v5 }
 0x7fb   : > { %v3217_v40 = vmul.f32 %v3215_v9, %v3183_v15 }
 0x7fd   : > { %v3222_v11 = vmul.f32 %v4428_v31, %v3217_v40  ;;  %3233 = sbr.rel (%p4177_p6) target bundleno = 2195 (0x893), region = 88 }
 0x7ff   : > { %v3227_v41 = vadd.f32 %v4429_v33, %v3222_v11 }
 0x801   : > { %3229 = vst.msk [vmem:[#allocation2 + $0x8] sm:$0xff] %vm729_vm1, %v3227_v41 }
 0x802   : > { %v4360_v43 = vld [vmem:[%s5204_s16 + $0x8] sm:$0xff]  ;;  %v4359_v44 = vld [vmem:[%s5204_s16] sm:$0xff]  ;;  %v3234_v45 = vpack.c.bf16 %v3227_v41, %v3226_v38 }
 0x803   : > { %3264 = vmatpush.bf16.msra.mxu0 %v4360_v43  ;;  %v4472_v46 = vld [vmem:[%s5205_s22] ss:$0 sm:$0xff] }
 0x807   : > { %3265 = vmatpush.bf16.msra.mxu0 %v4359_v44 }
 0x80a   : > { %4186 = vmatmul.msk.bf16.vlgmr.msra.gmra.mxu0 %vm729_vm1, %v3234_v45 }
 0x887   : > { %v3267_v47 = vpop.f32.mrf.mxu0 }
 0x888   : > { %v3268_v48 = vadd.f32 %v4472_v46, %v3267_v47 }
 0x88a   : > { %3272 = vst [vmem:[#allocation4] sm:$0xff] %v3268_v48 }
 0x88f   : > { %v3269_v50 = vpop.f32.mrf.mxu0 }
 0x890   : > { %v3270_v51 = vadd.f32 %v4472_v46, %v3269_v50 }
 0x892   : > { %3273 = vst [vmem:[#allocation4 + $0x8] sm:$0xff] %v3270_v51 }
 0x893 PF: > { %s5206_s18 = sld [smem:[#allocation8_spill]]  ;;  %s4544_s3 = smov [#allocation4]  }
 0x894   : > { %s5208_s20 = sld [smem:[#allocation15_spill]]  ;;  %s3282_s14 = sshll.u32 %s4544_s3, 4  ;;  %s3283_s14 = int_to_ptr.vmem [resolvable:$true] %s3282_s14 }
 0x895   : > { %s4545_s0 = smov 128  }
 0x899   : > { %s5207_s13 = sadd.s32 4294967295, %s5206_s18  }
 0x89a   : > { %p4365_p7 = scmp.eq.s32.totalorder %s5207_s13, 1  ;;  %s3284_s1 = sshll.u32 %s5208_s20, 4  ;;  %s3285_s1 = int_to_ptr.hbm [resolvable:$true] %s3284_s1 }
 0x89c   : > { %4362 = dma.vmem_to_hbm [thread:$0]  (%p4365_p7), %s3283_s14, 256, %s3285_s1, [#allocation5], %s4545_s0, %s4545_s0, %s4540_s30  }
 0x89d   : > { %4514 = dma.done.wait (%p4365_p7), [#allocation5], 256  }
 0x89e   : > { %4516 = vsyncadd (%p4365_p7), [#allocation5], 4294967040 }
 0x89f PF: > { %s5209_s25 = sld [smem:[#allocation8_spill]] }
 0x8a0   : > { %s5210_s18 = sld [smem:[#allocation7_spill]] }
 0x8a1   : > { %s5211_s19 = sld [smem:[#allocation9_spill]] }
 0x8a5   : > { %s26_s20 = sadd.s32 1, %s5209_s25  }
 0x8a6   : > { %p23_p8 = scmp.ge.s32.totalorder %s26_s20, 4  }
 0x8a8   :  { %25 = sbr.rel (!%p23_p8) target bundleno = 9 (0x9), region = 152 }
 0x8ad   :  { %3301 = vsyncpa [#allocation5], 1 }
 0x8ae   :  { %3303 = vsyncpa [#allocation5 + $0x1], 1 }

</bundles_post_ra>
